<compile_context>
chip_gen: v5e
topology: v5e:2x2
jax: 0.10.0
libtpu: 0.0.40
codegen_flags: <defaults>
</compile_context>

<pallas_src>
import functools

import jax
import jax.numpy as jnp
from jax.experimental import pallas as pl
from jax.experimental.pallas import tpu as pltpu

_EPS = 1e-12  # matches the custom LayerNorm class in the reference


# --------------------------- per-generation config ---------------------------

def _vmem_limit_bytes():
    cap = 64 * 1024 * 1024
    try:
        info = pltpu.get_tpu_info()
        cap = int(getattr(info, "vmem_capacity_bytes", cap)) or cap
    except Exception:
        pass
    # leave headroom: 3/4 of physical VMEM, capped at 112 MiB
    return min(cap * 3 // 4, 112 * 1024 * 1024)


_VMEM_LIMIT = _vmem_limit_bytes()
_ROW_TILE = 512 if _VMEM_LIMIT >= 72 * 1024 * 1024 else 256


def _compiler_params(n_parallel_axes=1):
    return pltpu.CompilerParams(
        dimension_semantics=("parallel",) * n_parallel_axes,
        vmem_limit_bytes=_VMEM_LIMIT,
    )


# ------------------------------ small helpers -------------------------------

def _pick_row_tile(m, preferred=None):
    """Largest row tile <= `preferred` that divides m (multiple of 8), else m."""
    if preferred is None:
        preferred = _ROW_TILE
    if m <= preferred:
        return m
    t = preferred
    while t >= 8:
        if m % t == 0:
            return t
        t //= 2
    return m


def _apply_ln(x, g, b, ln_type):
    """LayerNorm ('standard') or LayerNormNoVar ('no_var') over the last axis (f32)."""
    u = jnp.mean(x, axis=-1, keepdims=True)
    xc = x - u
    if ln_type == "standard":
        s = jnp.mean(xc * xc, axis=-1, keepdims=True)
        xc = xc * jax.lax.rsqrt(s + _EPS)  # rsqrt -> EUP slot, not a VPU divide
    return g * xc + b


def _bf16(x):
    return x.astype(jnp.bfloat16)


# ------------------------------ Pallas kernels -------------------------------

def _linear_kernel(x_ref, w_ref, b_ref, o_ref):
    o_ref[...] = (
        jnp.dot(_bf16(x_ref[...]), w_ref[...], preferred_element_type=jnp.float32)
        + b_ref[...]
    )


def linear(x, w, b, *, row_tile=None):
    """x: (M, K) @ w: (K, N) + b, row-tiled over M with weights VMEM-resident."""
    M, K = x.shape
    N = w.shape[1]
    tm = _pick_row_tile(M, row_tile)
    return pl.pallas_call(
        _linear_kernel,
        grid=(M // tm,),
        in_specs=[pl.BlockSpec((tm, K), lambda i: (i, 0)),
                  pl.BlockSpec((K, N), lambda i: (0, 0)),
                  pl.BlockSpec((1, N), lambda i: (0, 0))],
        out_specs=pl.BlockSpec((tm, N), lambda i: (i, 0)),
        out_shape=jax.ShapeDtypeStruct((M, N), jnp.float32),
        compiler_params=_compiler_params(),
    )(x, w, b.reshape(1, N))


def _ln_linear_kernel(x_ref, g_ref, b_ref, w_ref, bias_ref, o_ref, *, ln_type):
    xn = _apply_ln(x_ref[...], g_ref[...], b_ref[...], ln_type)
    o_ref[...] = (
        jnp.dot(_bf16(xn), w_ref[...], preferred_element_type=jnp.float32)
        + bias_ref[...]
    )


def ln_linear(x, g, b, w, bias, *, ln_type, row_tile=None):
    """Fused LayerNorm + Linear (used for the mlp head)."""
    M, D = x.shape
    N = w.shape[1]
    tm = _pick_row_tile(M, row_tile)
    return pl.pallas_call(
        functools.partial(_ln_linear_kernel, ln_type=ln_type),
        grid=(M // tm,),
        in_specs=[pl.BlockSpec((tm, D), lambda i: (i, 0)),
                  pl.BlockSpec((1, D), lambda i: (0, 0)),
                  pl.BlockSpec((1, D), lambda i: (0, 0)),
                  pl.BlockSpec((D, N), lambda i: (0, 0)),
                  pl.BlockSpec((1, N), lambda i: (0, 0))],
        out_specs=pl.BlockSpec((tm, N), lambda i: (i, 0)),
        out_shape=jax.ShapeDtypeStruct((M, N), jnp.float32),
        compiler_params=_compiler_params(),
    )(x, g.reshape(1, D), b.reshape(1, D), w, bias.reshape(1, N))


def _layer_kernel(x_ref, g1_ref, b1_ref, wqkv_ref, *rest, heads, dim_head,
                  n_tokens, ln_type, project_out):
    """One full transformer layer: Residual(PreNorm(Attn)) + Residual(PreNorm(FFN))."""
    if project_out:
        (wo_ref, bo_ref, g2_ref, b2_ref,
         w1_ref, fb1_ref, w2_ref, fb2_ref, o_ref) = rest
    else:
        (g2_ref, b2_ref, w1_ref, fb1_ref, w2_ref, fb2_ref, o_ref) = rest
        wo_ref = bo_ref = None

    x = x_ref[0]                                   # (n_pad, dim) f32
    n_pad, dim = x.shape
    inner = heads * dim_head

    # ---------------- attention sub-block ----------------
    xn = _apply_ln(x, g1_ref[...], b1_ref[...], ln_type)
    # single wide QKV matmul, bf16 operands, f32 accumulation
    qkv = jnp.dot(_bf16(xn), wqkv_ref[...], preferred_element_type=jnp.float32)

    # additive key-padding bias: 0 for real tokens, -1e30 for padded key columns
    col = jax.lax.broadcasted_iota(jnp.int32, (1, n_pad), 1)
    key_bias = jnp.where(col < n_tokens, 0.0, -1e30).astype(jnp.float32)

    acc = jnp.zeros((n_pad, dim if project_out else inner), jnp.float32)
    for h in range(heads):                         # static unroll over heads
        q0 = h * dim_head
        qh = qkv[:, q0:q0 + dim_head]
        kh = qkv[:, inner + q0:inner + q0 + dim_head]
        vh = qkv[:, 2 * inner + q0:2 * inner + q0 + dim_head]
        # 1/sqrt(dim_head) is already folded into the q columns of wqkv
        s = jax.lax.dot_general(
            _bf16(qh), _bf16(kh), (((1,), (1,)), ((), ())),
            preferred_element_type=jnp.float32) + key_bias
        m = jnp.max(s, axis=-1, keepdims=True)
        p = jnp.exp(s - m)
        denom = jnp.sum(p, axis=-1, keepdims=True)
        attn = _bf16(p * pl.reciprocal(denom, approx=False))
        if project_out:
            # fold the output projection per head: attn @ (v_h @ Wo_h)
            pv = jnp.dot(_bf16(vh), wo_ref[q0:q0 + dim_head, :],
                         preferred_element_type=jnp.float32)
            acc = acc + jnp.dot(attn, _bf16(pv),
                                preferred_element_type=jnp.float32)
        else:
            acc = acc + jnp.dot(attn, _bf16(vh),
                                preferred_element_type=jnp.float32)
    if project_out:
        acc = acc + bo_ref[...]
    x1 = x + acc                                   # residual 1

    # ---------------- feed-forward sub-block ----------------
    xn2 = _apply_ln(x1, g2_ref[...], b2_ref[...], ln_type)
    h1 = jnp.dot(_bf16(xn2), w1_ref[...],
                 preferred_element_type=jnp.float32) + fb1_ref[...]
    h1 = jnp.maximum(h1, 0.0)                      # ReLU
    out = jnp.dot(_bf16(h1), w2_ref[...],
                  preferred_element_type=jnp.float32) + fb2_ref[...]
    o_ref[0] = x1 + out                            # residual 2


def transformer_layer(x, layer, *, heads, dim_head, n_tokens, ln_type,
                      project_out):
    """One fused pallas_call per layer; grid over batch, weights VMEM-resident."""
    B, n_pad, dim = x.shape
    inner = heads * dim_head
    mlp = layer["w1"].shape[1]

    args = [x,
            layer["ln1_g"].reshape(1, dim), layer["ln1_b"].reshape(1, dim),
            layer["wqkv"]]
    in_specs = [pl.BlockSpec((1, n_pad, dim), lambda i: (i, 0, 0)),
                pl.BlockSpec((1, dim), lambda i: (0, 0)),
                pl.BlockSpec((1, dim), lambda i: (0, 0)),
                pl.BlockSpec((dim, 3 * inner), lambda i: (0, 0))]
    if project_out:
        args += [layer["wo"], layer["bo"].reshape(1, dim)]
        in_specs += [pl.BlockSpec((inner, dim), lambda i: (0, 0)),
                     pl.BlockSpec((1, dim), lambda i: (0, 0))]
    args += [layer["ln2_g"].reshape(1, dim), layer["ln2_b"].reshape(1, dim),
             layer["w1"], layer["b1"].reshape(1, mlp),
             layer["w2"], layer["b2"].reshape(1, dim)]
    in_specs += [pl.BlockSpec((1, dim), lambda i: (0, 0)),
                 pl.BlockSpec((1, dim), lambda i: (0, 0)),
                 pl.BlockSpec((dim, mlp), lambda i: (0, 0)),
                 pl.BlockSpec((1, mlp), lambda i: (0, 0)),
                 pl.BlockSpec((mlp, dim), lambda i: (0, 0)),
                 pl.BlockSpec((1, dim), lambda i: (0, 0))]

    return pl.pallas_call(
        functools.partial(_layer_kernel, heads=heads, dim_head=dim_head,
                          n_tokens=n_tokens, ln_type=ln_type,
                          project_out=project_out),
        grid=(B,),
        in_specs=in_specs,
        out_specs=pl.BlockSpec((1, n_pad, dim), lambda i: (i, 0, 0)),
        out_shape=jax.ShapeDtypeStruct((B, n_pad, dim), jnp.float32),
        compiler_params=_compiler_params(),
    )(*args)


# -------------------------------- parameters ---------------------------------

def init_params(key, *, image_size, patch_size, channels, dim, depth, heads,
                dim_head, mlp_dim, num_classes):
    """Canonical f32 parameters (weights stored as (in, out) = nn.Linear W^T)."""
    num_patches = (image_size // patch_size) ** 2
    patch_dim = channels * patch_size ** 2
    inner_dim = heads * dim_head

    counter = [0]

    def next_key():
        counter[0] += 1
        return jax.random.fold_in(key, counter[0])

    def w(shape, scale=0.02):
        return scale * jax.random.normal(next_key(), shape, dtype=jnp.float32)

    params = {
        "patch_w": w((patch_dim, dim)),
        "patch_b": jnp.zeros((dim,), jnp.float32),
        "pos_embedding": jax.random.normal(next_key(), (num_patches + 1, dim),
                                           dtype=jnp.float32),
        "cls_token": jax.random.normal(next_key(), (1, 1, dim),
                                       dtype=jnp.float32),
        "layers": [],
        "head_ln_g": jnp.ones((dim,), jnp.float32),
        "head_ln_b": jnp.zeros((dim,), jnp.float32),
        "head_w": w((dim, num_classes)),
        "head_b": jnp.zeros((num_classes,), jnp.float32),
    }
    for _ in range(depth):
        params["layers"].append({
            "ln1_g": jnp.ones((dim,), jnp.float32),
            "ln1_b": jnp.zeros((dim,), jnp.float32),
            "wqkv": w((dim, 3 * inner_dim)),    # [Wq | Wk | Wv], bias-free
            "wo": w((inner_dim, dim)),
            "bo": jnp.zeros((dim,), jnp.float32),
            "ln2_g": jnp.ones((dim,), jnp.float32),
            "ln2_b": jnp.zeros((dim,), jnp.float32),
            "w1": w((dim, mlp_dim)),
            "b1": jnp.zeros((mlp_dim,), jnp.float32),
            "w2": w((mlp_dim, dim)),
            "b2": jnp.zeros((dim,), jnp.float32),
        })
    return params


def prepare_params(params, *, heads, dim_head):
    """Kernel-ready params: bf16 matmul weights, softmax scale folded into Wq,
    classifier head padded to a 128-lane-dense output width."""
    scale = dim_head ** (-0.5)
    inner = heads * dim_head
    prepped = dict(params)
    prepped["patch_w"] = params["patch_w"].astype(jnp.bfloat16)

    layers = []
    for layer in params["layers"]:
        l = dict(layer)
        wqkv = layer["wqkv"].at[:, :inner].multiply(scale)   # fold 1/sqrt(d) into Wq
        l["wqkv"] = wqkv.astype(jnp.bfloat16)
        l["wo"] = layer["wo"].astype(jnp.bfloat16)
        l["w1"] = layer["w1"].astype(jnp.bfloat16)
        l["w2"] = layer["w2"].astype(jnp.bfloat16)
        layers.append(l)
    prepped["layers"] = layers

    dim, nc = params["head_w"].shape
    nc_pad = max(128, ((nc + 127) // 128) * 128)
    head_w = jnp.zeros((dim, nc_pad), jnp.float32).at[:, :nc].set(params["head_w"])
    head_b = jnp.zeros((nc_pad,), jnp.float32).at[:nc].set(params["head_b"])
    prepped["head_w"] = head_w.astype(jnp.bfloat16)
    prepped["head_b"] = head_b
    return prepped


# --------------------------------- forward -----------------------------------

def vit_forward(params, img, *, patch_size, heads, dim_head, num_classes,
                pool="cls", layer_norm_type="standard"):
    assert layer_norm_type in ("standard", "no_var")
    B, C, H, W = img.shape
    p = patch_size
    nh, nw = H // p, W // p
    N = nh * nw
    dim = params["patch_w"].shape[1]
    project_out = not (heads == 1 and dim_head == dim)

    # 'b c (h p1) (w p2) -> b (h w) (p1 p2 c)'   (pure data movement, plain JAX)
    x = img.reshape(B, C, nh, p, nw, p)
    x = x.transpose(0, 2, 4, 3, 5, 1).reshape(B * N, p * p * C)

    # patch embedding (row-tiled linear, bf16 weights)
    x = linear(x, params["patch_w"], params["patch_b"]).reshape(B, N, dim)

    # prepend cls token, add positional embedding (emb dropout = identity)
    cls = jnp.broadcast_to(params["cls_token"], (B, 1, dim))
    x = jnp.concatenate([cls, x], axis=1)                  # (B, N+1, dim)
    n1 = N + 1
    x = x + params["pos_embedding"][:n1][None]

    # pad token count to a multiple of 8 once; mask/slice at use sites
    n_pad = ((n1 + 7) // 8) * 8
    if n_pad != n1:
        x = jnp.pad(x, ((0, 0), (0, n_pad - n1), (0, 0)))

    for layer in params["layers"]:
        x = transformer_layer(x, layer, heads=heads, dim_head=dim_head,
                              n_tokens=n1, ln_type=layer_norm_type,
                              project_out=project_out)

    # pool (only the n1 real tokens)
    pooled = x[:, :n1].mean(axis=1) if pool == "mean" else x[:, 0]   # (B, dim)

    # mlp head: fused LayerNorm + Linear (lane-dense padded output), slice back
    logits = ln_linear(pooled, params["head_ln_g"], params["head_ln_b"],
                       params["head_w"], params["head_b"],
                       ln_type=layer_norm_type)
    return logits[:, :num_classes]


# ----------------------------------- main ------------------------------------

if __name__ == "__main__":
    image_size = 16
    patch_size = 8
    channels = 3
    dim = 32
    depth = 2
    heads = 4
    dim_head = 16
    mlp_dim = 64
    num_classes = 10
    batch = 2
    layer_norm_type = "standard"

    key = jax.random.PRNGKey(0)
    pkey, ikey = jax.random.split(key)

    params = init_params(
        pkey,
        image_size=image_size, patch_size=patch_size, channels=channels,
        dim=dim, depth=depth, heads=heads, dim_head=dim_head,
        mlp_dim=mlp_dim, num_classes=num_classes,
    )
    prepped = prepare_params(params, heads=heads, dim_head=dim_head)

    img = jax.random.normal(ikey, (batch, channels, image_size, image_size),
                            dtype=jnp.float32)

    fwd = jax.jit(functools.partial(
        vit_forward, patch_size=patch_size, heads=heads, dim_head=dim_head,
        num_classes=num_classes, pool="cls", layer_norm_type=layer_norm_type))

    logits = fwd(prepped, img)
    jax.block_until_ready(logits)
    assert logits.shape == (batch, num_classes)
    assert bool(jnp.all(jnp.isfinite(logits)))
    print("KERNEL_OK")
</pallas_src>

<mosaic_0001>
module attributes {stable_mosaic.version = 11 : i64} {
  func.func @_linear_kernel(%arg0: i32, %arg1: memref<8x192xf32, #tpu.memory_space<vmem>>, %arg2: memref<192x32xbf16, #tpu.memory_space<vmem>>, %arg3: memref<1x32xf32, #tpu.memory_space<vmem>>, %arg4: memref<8x32xf32, #tpu.memory_space<vmem>>) attributes {dimension_semantics = [#tpu.dimension_semantics<parallel>], iteration_bounds = array<i64: 1>, scalar_prefetch = 0 : i64, scratch_operands = 0 : i64, tpu.core_type = #tpu.core_type<tc>, window_params = [{transform_indices = @transform_0, window_bounds = array<i64: 8, 192>}, {pipeline_mode = #tpu.pipeline_mode<synchronous>, transform_indices = @transform_1, window_bounds = array<i64: 192, 32>}, {pipeline_mode = #tpu.pipeline_mode<synchronous>, transform_indices = @transform_2, window_bounds = array<i64: 1, 32>}, {transform_indices = @transform_3, window_bounds = array<i64: 8, 32>}]} {
    %c0 = arith.constant 0 : index
    %c0_0 = arith.constant 0 : index
    %0 = vector.load %arg1[%c0, %c0_0] : memref<8x192xf32, #tpu.memory_space<vmem>>, vector<8x192xf32>
    %1 = arith.truncf %0 : vector<8x192xf32> to vector<8x192xbf16>
    %c0_1 = arith.constant 0 : index
    %c0_2 = arith.constant 0 : index
    %2 = vector.load %arg2[%c0_1, %c0_2] : memref<192x32xbf16, #tpu.memory_space<vmem>>, vector<192x32xbf16>
    %cst = arith.constant dense<0.000000e+00> : vector<8x32xf32>
    %3 = tpu.matmul %1, %2, %cst {dimension_numbers = #tpu.dot_dimension_numbers<[1], [0], [0], [1], [0, 0, 1, 1], [], []>} : vector<8x192xbf16>, vector<192x32xbf16>, vector<8x32xf32> -> vector<8x32xf32>
    %c0_3 = arith.constant 0 : index
    %c0_4 = arith.constant 0 : index
    %4 = vector.load %arg3[%c0_3, %c0_4] : memref<1x32xf32, #tpu.memory_space<vmem>>, vector<1x32xf32>
    %5 = vector.broadcast %4 : vector<1x32xf32> to vector<8x32xf32>
    %6 = arith.addf %3, %5 : vector<8x32xf32>
    %c0_5 = arith.constant 0 : index
    %c0_6 = arith.constant 0 : index
    %7 = vector.load %arg4[%c0_5, %c0_6] : memref<8x32xf32, #tpu.memory_space<vmem>>, vector<8x32xf32>
    tpu.vector_store %arg4[%c0_5, %c0_6], %6 {strides = array<i32>} : memref<8x32xf32, #tpu.memory_space<vmem>>, vector<8x32xf32>,
    return
  }
  func.func @transform_0(%arg0: i32) -> (i32, i32) {
    %c0_i32 = arith.constant 0 : i32
    %c0_i32_0 = arith.constant 0 : i32
    return %arg0, %c0_i32 : i32, i32
  }
  func.func @transform_1(%arg0: i32) -> (i32, i32) {
    %c0_i32 = arith.constant 0 : i32
    %c0_i32_0 = arith.constant 0 : i32
    %c0_i32_1 = arith.constant 0 : i32
    return %c0_i32, %c0_i32_0 : i32, i32
  }
  func.func @transform_2(%arg0: i32) -> (i32, i32) {
    %c0_i32 = arith.constant 0 : i32
    %c0_i32_0 = arith.constant 0 : i32
    %c0_i32_1 = arith.constant 0 : i32
    return %c0_i32, %c0_i32_0 : i32, i32
  }
  func.func @transform_3(%arg0: i32) -> (i32, i32) {
    %c0_i32 = arith.constant 0 : i32
    %c0_i32_0 = arith.constant 0 : i32
    return %arg0, %c0_i32 : i32, i32
  }
}

module attributes {stable_mosaic.version = 11 : i64} {
  func.func @_ln_linear_kernel(%arg0: i32, %arg1: memref<2x32xf32, #tpu.memory_space<vmem>>, %arg2: memref<1x32xf32, #tpu.memory_space<vmem>>, %arg3: memref<1x32xf32, #tpu.memory_space<vmem>>, %arg4: memref<32x128xbf16, #tpu.memory_space<vmem>>, %arg5: memref<1x128xf32, #tpu.memory_space<vmem>>, %arg6: memref<2x128xf32, #tpu.memory_space<vmem>>) attributes {dimension_semantics = [#tpu.dimension_semantics<parallel>], iteration_bounds = array<i64: 1>, scalar_prefetch = 0 : i64, scratch_operands = 0 : i64, tpu.core_type = #tpu.core_type<tc>, window_params = [{transform_indices = @transform_0, window_bounds = array<i64: 2, 32>}, {pipeline_mode = #tpu.pipeline_mode<synchronous>, transform_indices = @transform_1, window_bounds = array<i64: 1, 32>}, {pipeline_mode = #tpu.pipeline_mode<synchronous>, transform_indices = @transform_2, window_bounds = array<i64: 1, 32>}, {pipeline_mode = #tpu.pipeline_mode<synchronous>, transform_indices = @transform_3, window_bounds = array<i64: 32, 128>}, {pipeline_mode = #tpu.pipeline_mode<synchronous>, transform_indices = @transform_4, window_bounds = array<i64: 1, 128>}, {transform_indices = @transform_5, window_bounds = array<i64: 2, 128>}]} {
    %c0 = arith.constant 0 : index
    %c0_0 = arith.constant 0 : index
    %0 = vector.load %arg1[%c0, %c0_0] : memref<2x32xf32, #tpu.memory_space<vmem>>, vector<2x32xf32>
    %c0_1 = arith.constant 0 : index
    %c0_2 = arith.constant 0 : index
    %1 = vector.load %arg2[%c0_1, %c0_2] : memref<1x32xf32, #tpu.memory_space<vmem>>, vector<1x32xf32>
    %c0_3 = arith.constant 0 : index
    %c0_4 = arith.constant 0 : index
    %2 = vector.load %arg3[%c0_3, %c0_4] : memref<1x32xf32, #tpu.memory_space<vmem>>, vector<1x32xf32>
    %cst = arith.constant dense<0.000000e+00> : vector<2xf32>
    %3 = vector.multi_reduction <add>, %0, %cst [1] : vector<2x32xf32> to vector<2xf32>
    %4 = vector.shape_cast %3 : vector<2xf32> to vector<2x1xf32>
    %cst_5 = arith.constant 3.200000e+01 : f32
    %5 = vector.broadcast %cst_5 : f32 to vector<2x1xf32>
    %6 = arith.divf %4, %5 : vector<2x1xf32>
    %7 = vector.broadcast %6 : vector<2x1xf32> to vector<2x32xf32>
    %8 = arith.subf %0, %7 : vector<2x32xf32>
    %9 = arith.mulf %8, %8 : vector<2x32xf32>
    %cst_6 = arith.constant dense<0.000000e+00> : vector<2xf32>
    %10 = vector.multi_reduction <add>, %9, %cst_6 [1] : vector<2x32xf32> to vector<2xf32>
    %11 = vector.shape_cast %10 : vector<2xf32> to vector<2x1xf32>
    %cst_7 = arith.constant 3.200000e+01 : f32
    %12 = vector.broadcast %cst_7 : f32 to vector<2x1xf32>
    %13 = arith.divf %11, %12 : vector<2x1xf32>
    %cst_8 = arith.constant 9.99999996E-13 : f32
    %14 = vector.broadcast %cst_8 : f32 to vector<2x1xf32>
    %15 = arith.addf %13, %14 : vector<2x1xf32>
    %16 = math.rsqrt %15 : vector<2x1xf32>
    %17 = vector.broadcast %16 : vector<2x1xf32> to vector<2x32xf32>
    %18 = arith.mulf %8, %17 : vector<2x32xf32>
    %19 = vector.broadcast %1 : vector<1x32xf32> to vector<2x32xf32>
    %20 = arith.mulf %19, %18 : vector<2x32xf32>
    %21 = vector.broadcast %2 : vector<1x32xf32> to vector<2x32xf32>
    %22 = arith.addf %20, %21 : vector<2x32xf32>
    %23 = arith.truncf %22 : vector<2x32xf32> to vector<2x32xbf16>
    %c0_9 = arith.constant 0 : index
    %c0_10 = arith.constant 0 : index
    %24 = vector.load %arg4[%c0_9, %c0_10] : memref<32x128xbf16, #tpu.memory_space<vmem>>, vector<32x128xbf16>
    %cst_11 = arith.constant dense<0.000000e+00> : vector<2x128xf32>
    %25 = tpu.matmul %23, %24, %cst_11 {dimension_numbers = #tpu.dot_dimension_numbers<[1], [0], [0], [1], [0, 0, 1, 1], [], []>} : vector<2x32xbf16>, vector<32x128xbf16>, vector<2x128xf32> -> vector<2x128xf32>
    %c0_12 = arith.constant 0 : index
    %c0_13 = arith.constant 0 : index
    %26 = vector.load %arg5[%c0_12, %c0_13] : memref<1x128xf32, #tpu.memory_space<vmem>>, vector<1x128xf32>
    %27 = vector.broadcast %26 : vector<1x128xf32> to vector<2x128xf32>
    %28 = arith.addf %25, %27 : vector<2x128xf32>
    %c0_14 = arith.constant 0 : index
    %c0_15 = arith.constant 0 : index
    %29 = vector.load %arg6[%c0_14, %c0_15] : memref<2x128xf32, #tpu.memory_space<vmem>>, vector<2x128xf32>
    tpu.vector_store %arg6[%c0_14, %c0_15], %28 {strides = array<i32>} : memref<2x128xf32, #tpu.memory_space<vmem>>, vector<2x128xf32>,
    return
  }
  func.func @transform_0(%arg0: i32) -> (i32, i32) {
    %c0_i32 = arith.constant 0 : i32
    %c0_i32_0 = arith.constant 0 : i32
    return %arg0, %c0_i32 : i32, i32
  }
  func.func @transform_1(%arg0: i32) -> (i32, i32) {
    %c0_i32 = arith.constant 0 : i32
    %c0_i32_0 = arith.constant 0 : i32
    %c0_i32_1 = arith.constant 0 : i32
    return %c0_i32, %c0_i32_0 : i32, i32
  }
  func.func @transform_2(%arg0: i32) -> (i32, i32) {
    %c0_i32 = arith.constant 0 : i32
    %c0_i32_0 = arith.constant 0 : i32
    %c0_i32_1 = arith.constant 0 : i32
    return %c0_i32, %c0_i32_0 : i32, i32
  }
  func.func @transform_3(%arg0: i32) -> (i32, i32) {
    %c0_i32 = arith.constant 0 : i32
    %c0_i32_0 = arith.constant 0 : i32
    %c0_i32_1 = arith.constant 0 : i32
    return %c0_i32, %c0_i32_0 : i32, i32
  }
  func.func @transform_4(%arg0: i32) -> (i32, i32) {
    %c0_i32 = arith.constant 0 : i32
    %c0_i32_0 = arith.constant 0 : i32
    %c0_i32_1 = arith.constant 0 : i32
    return %c0_i32, %c0_i32_0 : i32, i32
  }
  func.func @transform_5(%arg0: i32) -> (i32, i32) {
    %c0_i32 = arith.constant 0 : i32
    %c0_i32_0 = arith.constant 0 : i32
    return %arg0, %c0_i32 : i32, i32
  }
}

module attributes {stable_mosaic.version = 11 : i64} {
  func.func @_layer_kernel(%arg0: i32, %arg1: memref<1x8x32xf32, #tpu.memory_space<vmem>>, %arg2: memref<1x32xf32, #tpu.memory_space<vmem>>, %arg3: memref<1x32xf32, #tpu.memory_space<vmem>>, %arg4: memref<32x192xbf16, #tpu.memory_space<vmem>>, %arg5: memref<64x32xbf16, #tpu.memory_space<vmem>>, %arg6: memref<1x32xf32, #tpu.memory_space<vmem>>, %arg7: memref<1x32xf32, #tpu.memory_space<vmem>>, %arg8: memref<1x32xf32, #tpu.memory_space<vmem>>, %arg9: memref<32x64xbf16, #tpu.memory_space<vmem>>, %arg10: memref<1x64xf32, #tpu.memory_space<vmem>>, %arg11: memref<64x32xbf16, #tpu.memory_space<vmem>>, %arg12: memref<1x32xf32, #tpu.memory_space<vmem>>, %arg13: memref<1x8x32xf32, #tpu.memory_space<vmem>>) attributes {dimension_semantics = [#tpu.dimension_semantics<parallel>], iteration_bounds = array<i64: 2>, scalar_prefetch = 0 : i64, scratch_operands = 0 : i64, tpu.core_type = #tpu.core_type<tc>, window_params = [{transform_indices = @transform_0, window_bounds = array<i64: 1, 8, 32>}, {pipeline_mode = #tpu.pipeline_mode<synchronous>, transform_indices = @transform_1, window_bounds = array<i64: 1, 32>}, {pipeline_mode = #tpu.pipeline_mode<synchronous>, transform_indices = @transform_2, window_bounds = array<i64: 1, 32>}, {pipeline_mode = #tpu.pipeline_mode<synchronous>, transform_indices = @transform_3, window_bounds = array<i64: 32, 192>}, {pipeline_mode = #tpu.pipeline_mode<synchronous>, transform_indices = @transform_4, window_bounds = array<i64: 64, 32>}, {pipeline_mode = #tpu.pipeline_mode<synchronous>, transform_indices = @transform_5, window_bounds = array<i64: 1, 32>}, {pipeline_mode = #tpu.pipeline_mode<synchronous>, transform_indices = @transform_6, window_bounds = array<i64: 1, 32>}, {pipeline_mode = #tpu.pipeline_mode<synchronous>, transform_indices = @transform_7, window_bounds = array<i64: 1, 32>}, {pipeline_mode = #tpu.pipeline_mode<synchronous>, transform_indices = @transform_8, window_bounds = array<i64: 32, 64>}, {pipeline_mode = #tpu.pipeline_mode<synchronous>, transform_indices = @transform_9, window_bounds = array<i64: 1, 64>}, {pipeline_mode = #tpu.pipeline_mode<synchronous>, transform_indices = @transform_10, window_bounds = array<i64: 64, 32>}, {pipeline_mode = #tpu.pipeline_mode<synchronous>, transform_indices = @transform_11, window_bounds = array<i64: 1, 32>}, {transform_indices = @transform_12, window_bounds = array<i64: 1, 8, 32>}]} {
    %c0 = arith.constant 0 : index
    %c0_0 = arith.constant 0 : index
    %c0_1 = arith.constant 0 : index
    %0 = vector.load %arg1[%c0, %c0_0, %c0_1] : memref<1x8x32xf32, #tpu.memory_space<vmem>>, vector<1x8x32xf32>
    %1 = vector.shape_cast %0 : vector<1x8x32xf32> to vector<8x32xf32>
    %c0_2 = arith.constant 0 : index
    %c0_3 = arith.constant 0 : index
    %2 = vector.load %arg2[%c0_2, %c0_3] : memref<1x32xf32, #tpu.memory_space<vmem>>, vector<1x32xf32>
    %c0_4 = arith.constant 0 : index
    %c0_5 = arith.constant 0 : index
    %3 = vector.load %arg3[%c0_4, %c0_5] : memref<1x32xf32, #tpu.memory_space<vmem>>, vector<1x32xf32>
    %cst = arith.constant dense<0.000000e+00> : vector<8xf32>
    %4 = vector.multi_reduction <add>, %1, %cst [1] : vector<8x32xf32> to vector<8xf32>
    %5 = vector.shape_cast %4 : vector<8xf32> to vector<8x1xf32>
    %cst_6 = arith.constant 3.200000e+01 : f32
    %6 = vector.broadcast %cst_6 : f32 to vector<8x1xf32>
    %7 = arith.divf %5, %6 : vector<8x1xf32>
    %8 = vector.broadcast %7 : vector<8x1xf32> to vector<8x32xf32>
    %9 = arith.subf %1, %8 : vector<8x32xf32>
    %10 = arith.mulf %9, %9 : vector<8x32xf32>
    %cst_7 = arith.constant dense<0.000000e+00> : vector<8xf32>
    %11 = vector.multi_reduction <add>, %10, %cst_7 [1] : vector<8x32xf32> to vector<8xf32>
    %12 = vector.shape_cast %11 : vector<8xf32> to vector<8x1xf32>
    %cst_8 = arith.constant 3.200000e+01 : f32
    %13 = vector.broadcast %cst_8 : f32 to vector<8x1xf32>
    %14 = arith.divf %12, %13 : vector<8x1xf32>
    %cst_9 = arith.constant 9.99999996E-13 : f32
    %15 = vector.broadcast %cst_9 : f32 to vector<8x1xf32>
    %16 = arith.addf %14, %15 : vector<8x1xf32>
    %17 = math.rsqrt %16 : vector<8x1xf32>
    %18 = vector.broadcast %17 : vector<8x1xf32> to vector<8x32xf32>
    %19 = arith.mulf %9, %18 : vector<8x32xf32>
    %20 = vector.broadcast %2 : vector<1x32xf32> to vector<8x32xf32>
    %21 = arith.mulf %20, %19 : vector<8x32xf32>
    %22 = vector.broadcast %3 : vector<1x32xf32> to vector<8x32xf32>
    %23 = arith.addf %21, %22 : vector<8x32xf32>
    %24 = arith.truncf %23 : vector<8x32xf32> to vector<8x32xbf16>
    %c0_10 = arith.constant 0 : index
    %c0_11 = arith.constant 0 : index
    %25 = vector.load %arg4[%c0_10, %c0_11] : memref<32x192xbf16, #tpu.memory_space<vmem>>, vector<32x192xbf16>
    %cst_12 = arith.constant dense<0.000000e+00> : vector<8x192xf32>
    %26 = tpu.matmul %24, %25, %cst_12 {dimension_numbers = #tpu.dot_dimension_numbers<[1], [0], [0], [1], [0, 0, 1, 1], [], []>} : vector<8x32xbf16>, vector<32x192xbf16>, vector<8x192xf32> -> vector<8x192xf32>
    %27 = tpu.iota {dimensions = array<i32: 1>} : vector<1x8xi32>
    %c5_i32 = arith.constant 5 : i32
    %28 = vector.broadcast %c5_i32 : i32 to vector<1x8xi32>
    %29 = arith.cmpi slt, %27, %28 : vector<1x8xi32>
    %cst_13 = arith.constant 0.000000e+00 : f32
    %cst_14 = arith.constant -1.000000e+30 : f32
    %30 = vector.broadcast %cst_13 : f32 to vector<1x8xf32>
    %31 = vector.broadcast %cst_14 : f32 to vector<1x8xf32>
    %32 = arith.select %29, %30, %31 : vector<1x8xi1>, vector<1x8xf32>
    %cst_15 = arith.constant 0.000000e+00 : f32
    %33 = vector.broadcast %cst_15 : f32 to vector<8x32xf32>
    %34 = vector.extract_strided_slice %26 {offsets = [0, 0], sizes = [8, 16], strides = [1, 1]} : vector<8x192xf32> to vector<8x16xf32>
    %35 = vector.extract_strided_slice %26 {offsets = [0, 64], sizes = [8, 16], strides = [1, 1]} : vector<8x192xf32> to vector<8x16xf32>
    %36 = vector.extract_strided_slice %26 {offsets = [0, 128], sizes = [8, 16], strides = [1, 1]} : vector<8x192xf32> to vector<8x16xf32>
    %37 = arith.truncf %34 : vector<8x16xf32> to vector<8x16xbf16>
    %38 = arith.truncf %35 : vector<8x16xf32> to vector<8x16xbf16>
    %cst_16 = arith.constant dense<0.000000e+00> : vector<8x8xf32>
    %39 = tpu.matmul %37, %38, %cst_16 {dimension_numbers = #tpu.dot_dimension_numbers<[1], [1], [0], [0], [0, 0, 1, 0], [], []>} : vector<8x16xbf16>, vector<8x16xbf16>, vector<8x8xf32> -> vector<8x8xf32>
    %40 = vector.broadcast %32 : vector<1x8xf32> to vector<8x8xf32>
    %41 = arith.addf %39, %40 : vector<8x8xf32>
    %cst_17 = arith.constant dense<0xFF800000> : vector<8xf32>
    %42 = vector.multi_reduction <maximumf>, %41, %cst_17 [1] : vector<8x8xf32> to vector<8xf32>
    %43 = vector.shape_cast %42 : vector<8xf32> to vector<8x1xf32>
    %44 = vector.broadcast %43 : vector<8x1xf32> to vector<8x8xf32>
    %45 = arith.subf %41, %44 : vector<8x8xf32>
    %46 = math.exp %45 : vector<8x8xf32>
    %cst_18 = arith.constant dense<0.000000e+00> : vector<8xf32>
    %47 = vector.multi_reduction <add>, %46, %cst_18 [1] : vector<8x8xf32> to vector<8xf32>
    %48 = vector.shape_cast %47 : vector<8xf32> to vector<8x1xf32>
    %49 = tpu.reciprocal %48 : vector<8x1xf32> -> vector<8x1xf32>
    %50 = vector.broadcast %49 : vector<8x1xf32> to vector<8x8xf32>
    %51 = arith.mulf %46, %50 : vector<8x8xf32>
    %52 = arith.truncf %51 : vector<8x8xf32> to vector<8x8xbf16>
    %53 = arith.truncf %36 : vector<8x16xf32> to vector<8x16xbf16>
    %c0_19 = arith.constant 0 : index
    %c0_20 = arith.constant 0 : index
    %54 = vector.load %arg5[%c0_19, %c0_20] : memref<64x32xbf16, #tpu.memory_space<vmem>>, vector<16x32xbf16>
    %cst_21 = arith.constant dense<0.000000e+00> : vector<8x32xf32>
    %55 = tpu.matmul %53, %54, %cst_21 {dimension_numbers = #tpu.dot_dimension_numbers<[1], [0], [0], [1], [0, 0, 1, 1], [], []>} : vector<8x16xbf16>, vector<16x32xbf16>, vector<8x32xf32> -> vector<8x32xf32>
    %56 = arith.truncf %55 : vector<8x32xf32> to vector<8x32xbf16>
    %cst_22 = arith.constant dense<0.000000e+00> : vector<8x32xf32>
    %57 = tpu.matmul %52, %56, %cst_22 {dimension_numbers = #tpu.dot_dimension_numbers<[1], [0], [0], [1], [0, 0, 1, 1], [], []>} : vector<8x8xbf16>, vector<8x32xbf16>, vector<8x32xf32> -> vector<8x32xf32>
    %58 = arith.addf %33, %57 : vector<8x32xf32>
    %59 = vector.extract_strided_slice %26 {offsets = [0, 16], sizes = [8, 16], strides = [1, 1]} : vector<8x192xf32> to vector<8x16xf32>
    %60 = vector.extract_strided_slice %26 {offsets = [0, 80], sizes = [8, 16], strides = [1, 1]} : vector<8x192xf32> to vector<8x16xf32>
    %61 = vector.extract_strided_slice %26 {offsets = [0, 144], sizes = [8, 16], strides = [1, 1]} : vector<8x192xf32> to vector<8x16xf32>
    %62 = arith.truncf %59 : vector<8x16xf32> to vector<8x16xbf16>
    %63 = arith.truncf %60 : vector<8x16xf32> to vector<8x16xbf16>
    %cst_23 = arith.constant dense<0.000000e+00> : vector<8x8xf32>
    %64 = tpu.matmul %62, %63, %cst_23 {dimension_numbers = #tpu.dot_dimension_numbers<[1], [1], [0], [0], [0, 0, 1, 0], [], []>} : vector<8x16xbf16>, vector<8x16xbf16>, vector<8x8xf32> -> vector<8x8xf32>
    %65 = vector.broadcast %32 : vector<1x8xf32> to vector<8x8xf32>
    %66 = arith.addf %64, %65 : vector<8x8xf32>
    %cst_24 = arith.constant dense<0xFF800000> : vector<8xf32>
    %67 = vector.multi_reduction <maximumf>, %66, %cst_24 [1] : vector<8x8xf32> to vector<8xf32>
    %68 = vector.shape_cast %67 : vector<8xf32> to vector<8x1xf32>
    %69 = vector.broadcast %68 : vector<8x1xf32> to vector<8x8xf32>
    %70 = arith.subf %66, %69 : vector<8x8xf32>
    %71 = math.exp %70 : vector<8x8xf32>
    %cst_25 = arith.constant dense<0.000000e+00> : vector<8xf32>
    %72 = vector.multi_reduction <add>, %71, %cst_25 [1] : vector<8x8xf32> to vector<8xf32>
    %73 = vector.shape_cast %72 : vector<8xf32> to vector<8x1xf32>
    %74 = tpu.reciprocal %73 : vector<8x1xf32> -> vector<8x1xf32>
    %75 = vector.broadcast %74 : vector<8x1xf32> to vector<8x8xf32>
    %76 = arith.mulf %71, %75 : vector<8x8xf32>
    %77 = arith.truncf %76 : vector<8x8xf32> to vector<8x8xbf16>
    %78 = arith.truncf %61 : vector<8x16xf32> to vector<8x16xbf16>
    %c16 = arith.constant 16 : index
    %c0_26 = arith.constant 0 : index
    %79 = vector.load %arg5[%c16, %c0_26] : memref<64x32xbf16, #tpu.memory_space<vmem>>, vector<16x32xbf16>
    %cst_27 = arith.constant dense<0.000000e+00> : vector<8x32xf32>
    %80 = tpu.matmul %78, %79, %cst_27 {dimension_numbers = #tpu.dot_dimension_numbers<[1], [0], [0], [1], [0, 0, 1, 1], [], []>} : vector<8x16xbf16>, vector<16x32xbf16>, vector<8x32xf32> -> vector<8x32xf32>
    %81 = arith.truncf %80 : vector<8x32xf32> to vector<8x32xbf16>
    %cst_28 = arith.constant dense<0.000000e+00> : vector<8x32xf32>
    %82 = tpu.matmul %77, %81, %cst_28 {dimension_numbers = #tpu.dot_dimension_numbers<[1], [0], [0], [1], [0, 0, 1, 1], [], []>} : vector<8x8xbf16>, vector<8x32xbf16>, vector<8x32xf32> -> vector<8x32xf32>
    %83 = arith.addf %58, %82 : vector<8x32xf32>
    %84 = vector.extract_strided_slice %26 {offsets = [0, 32], sizes = [8, 16], strides = [1, 1]} : vector<8x192xf32> to vector<8x16xf32>
    %85 = vector.extract_strided_slice %26 {offsets = [0, 96], sizes = [8, 16], strides = [1, 1]} : vector<8x192xf32> to vector<8x16xf32>
    %86 = vector.extract_strided_slice %26 {offsets = [0, 160], sizes = [8, 16], strides = [1, 1]} : vector<8x192xf32> to vector<8x16xf32>
    %87 = arith.truncf %84 : vector<8x16xf32> to vector<8x16xbf16>
    %88 = arith.truncf %85 : vector<8x16xf32> to vector<8x16xbf16>
    %cst_29 = arith.constant dense<0.000000e+00> : vector<8x8xf32>
    %89 = tpu.matmul %87, %88, %cst_29 {dimension_numbers = #tpu.dot_dimension_numbers<[1], [1], [0], [0], [0, 0, 1, 0], [], []>} : vector<8x16xbf16>, vector<8x16xbf16>, vector<8x8xf32> -> vector<8x8xf32>
    %90 = vector.broadcast %32 : vector<1x8xf32> to vector<8x8xf32>
    %91 = arith.addf %89, %90 : vector<8x8xf32>
    %cst_30 = arith.constant dense<0xFF800000> : vector<8xf32>
    %92 = vector.multi_reduction <maximumf>, %91, %cst_30 [1] : vector<8x8xf32> to vector<8xf32>
    %93 = vector.shape_cast %92 : vector<8xf32> to vector<8x1xf32>
    %94 = vector.broadcast %93 : vector<8x1xf32> to vector<8x8xf32>
    %95 = arith.subf %91, %94 : vector<8x8xf32>
    %96 = math.exp %95 : vector<8x8xf32>
    %cst_31 = arith.constant dense<0.000000e+00> : vector<8xf32>
    %97 = vector.multi_reduction <add>, %96, %cst_31 [1] : vector<8x8xf32> to vector<8xf32>
    %98 = vector.shape_cast %97 : vector<8xf32> to vector<8x1xf32>
    %99 = tpu.reciprocal %98 : vector<8x1xf32> -> vector<8x1xf32>
    %100 = vector.broadcast %99 : vector<8x1xf32> to vector<8x8xf32>
    %101 = arith.mulf %96, %100 : vector<8x8xf32>
    %102 = arith.truncf %101 : vector<8x8xf32> to vector<8x8xbf16>
    %103 = arith.truncf %86 : vector<8x16xf32> to vector<8x16xbf16>
    %c32 = arith.constant 32 : index
    %c0_32 = arith.constant 0 : index
    %104 = vector.load %arg5[%c32, %c0_32] : memref<64x32xbf16, #tpu.memory_space<vmem>>, vector<16x32xbf16>
    %cst_33 = arith.constant dense<0.000000e+00> : vector<8x32xf32>
    %105 = tpu.matmul %103, %104, %cst_33 {dimension_numbers = #tpu.dot_dimension_numbers<[1], [0], [0], [1], [0, 0, 1, 1], [], []>} : vector<8x16xbf16>, vector<16x32xbf16>, vector<8x32xf32> -> vector<8x32xf32>
    %106 = arith.truncf %105 : vector<8x32xf32> to vector<8x32xbf16>
    %cst_34 = arith.constant dense<0.000000e+00> : vector<8x32xf32>
    %107 = tpu.matmul %102, %106, %cst_34 {dimension_numbers = #tpu.dot_dimension_numbers<[1], [0], [0], [1], [0, 0, 1, 1], [], []>} : vector<8x8xbf16>, vector<8x32xbf16>, vector<8x32xf32> -> vector<8x32xf32>
    %108 = arith.addf %83, %107 : vector<8x32xf32>
    %109 = vector.extract_strided_slice %26 {offsets = [0, 48], sizes = [8, 16], strides = [1, 1]} : vector<8x192xf32> to vector<8x16xf32>
    %110 = vector.extract_strided_slice %26 {offsets = [0, 112], sizes = [8, 16], strides = [1, 1]} : vector<8x192xf32> to vector<8x16xf32>
    %111 = vector.extract_strided_slice %26 {offsets = [0, 176], sizes = [8, 16], strides = [1, 1]} : vector<8x192xf32> to vector<8x16xf32>
    %112 = arith.truncf %109 : vector<8x16xf32> to vector<8x16xbf16>
    %113 = arith.truncf %110 : vector<8x16xf32> to vector<8x16xbf16>
    %cst_35 = arith.constant dense<0.000000e+00> : vector<8x8xf32>
    %114 = tpu.matmul %112, %113, %cst_35 {dimension_numbers = #tpu.dot_dimension_numbers<[1], [1], [0], [0], [0, 0, 1, 0], [], []>} : vector<8x16xbf16>, vector<8x16xbf16>, vector<8x8xf32> -> vector<8x8xf32>
    %115 = vector.broadcast %32 : vector<1x8xf32> to vector<8x8xf32>
    %116 = arith.addf %114, %115 : vector<8x8xf32>
    %cst_36 = arith.constant dense<0xFF800000> : vector<8xf32>
    %117 = vector.multi_reduction <maximumf>, %116, %cst_36 [1] : vector<8x8xf32> to vector<8xf32>
    %118 = vector.shape_cast %117 : vector<8xf32> to vector<8x1xf32>
    %119 = vector.broadcast %118 : vector<8x1xf32> to vector<8x8xf32>
    %120 = arith.subf %116, %119 : vector<8x8xf32>
    %121 = math.exp %120 : vector<8x8xf32>
    %cst_37 = arith.constant dense<0.000000e+00> : vector<8xf32>
    %122 = vector.multi_reduction <add>, %121, %cst_37 [1] : vector<8x8xf32> to vector<8xf32>
    %123 = vector.shape_cast %122 : vector<8xf32> to vector<8x1xf32>
    %124 = tpu.reciprocal %123 : vector<8x1xf32> -> vector<8x1xf32>
    %125 = vector.broadcast %124 : vector<8x1xf32> to vector<8x8xf32>
    %126 = arith.mulf %121, %125 : vector<8x8xf32>
    %127 = arith.truncf %126 : vector<8x8xf32> to vector<8x8xbf16>
    %128 = arith.truncf %111 : vector<8x16xf32> to vector<8x16xbf16>
    %c48 = arith.constant 48 : index
    %c0_38 = arith.constant 0 : index
    %129 = vector.load %arg5[%c48, %c0_38] : memref<64x32xbf16, #tpu.memory_space<vmem>>, vector<16x32xbf16>
    %cst_39 = arith.constant dense<0.000000e+00> : vector<8x32xf32>
    %130 = tpu.matmul %128, %129, %cst_39 {dimension_numbers = #tpu.dot_dimension_numbers<[1], [0], [0], [1], [0, 0, 1, 1], [], []>} : vector<8x16xbf16>, vector<16x32xbf16>, vector<8x32xf32> -> vector<8x32xf32>
    %131 = arith.truncf %130 : vector<8x32xf32> to vector<8x32xbf16>
    %cst_40 = arith.constant dense<0.000000e+00> : vector<8x32xf32>
    %132 = tpu.matmul %127, %131, %cst_40 {dimension_numbers = #tpu.dot_dimension_numbers<[1], [0], [0], [1], [0, 0, 1, 1], [], []>} : vector<8x8xbf16>, vector<8x32xbf16>, vector<8x32xf32> -> vector<8x32xf32>
    %133 = arith.addf %108, %132 : vector<8x32xf32>
    %c0_41 = arith.constant 0 : index
    %c0_42 = arith.constant 0 : index
    %134 = vector.load %arg6[%c0_41, %c0_42] : memref<1x32xf32, #tpu.memory_space<vmem>>, vector<1x32xf32>
    %135 = vector.broadcast %134 : vector<1x32xf32> to vector<8x32xf32>
    %136 = arith.addf %133, %135 : vector<8x32xf32>
    %137 = arith.addf %1, %136 : vector<8x32xf32>
    %c0_43 = arith.constant 0 : index
    %c0_44 = arith.constant 0 : index
    %138 = vector.load %arg7[%c0_43, %c0_44] : memref<1x32xf32, #tpu.memory_space<vmem>>, vector<1x32xf32>
    %c0_45 = arith.constant 0 : index
    %c0_46 = arith.constant 0 : index
    %139 = vector.load %arg8[%c0_45, %c0_46] : memref<1x32xf32, #tpu.memory_space<vmem>>, vector<1x32xf32>
    %cst_47 = arith.constant dense<0.000000e+00> : vector<8xf32>
    %140 = vector.multi_reduction <add>, %137, %cst_47 [1] : vector<8x32xf32> to vector<8xf32>
    %141 = vector.shape_cast %140 : vector<8xf32> to vector<8x1xf32>
    %cst_48 = arith.constant 3.200000e+01 : f32
    %142 = vector.broadcast %cst_48 : f32 to vector<8x1xf32>
    %143 = arith.divf %141, %142 : vector<8x1xf32>
    %144 = vector.broadcast %143 : vector<8x1xf32> to vector<8x32xf32>
    %145 = arith.subf %137, %144 : vector<8x32xf32>
    %146 = arith.mulf %145, %145 : vector<8x32xf32>
    %cst_49 = arith.constant dense<0.000000e+00> : vector<8xf32>
    %147 = vector.multi_reduction <add>, %146, %cst_49 [1] : vector<8x32xf32> to vector<8xf32>
    %148 = vector.shape_cast %147 : vector<8xf32> to vector<8x1xf32>
    %cst_50 = arith.constant 3.200000e+01 : f32
    %149 = vector.broadcast %cst_50 : f32 to vector<8x1xf32>
    %150 = arith.divf %148, %149 : vector<8x1xf32>
    %cst_51 = arith.constant 9.99999996E-13 : f32
    %151 = vector.broadcast %cst_51 : f32 to vector<8x1xf32>
    %152 = arith.addf %150, %151 : vector<8x1xf32>
    %153 = math.rsqrt %152 : vector<8x1xf32>
    %154 = vector.broadcast %153 : vector<8x1xf32> to vector<8x32xf32>
    %155 = arith.mulf %145, %154 : vector<8x32xf32>
    %156 = vector.broadcast %138 : vector<1x32xf32> to vector<8x32xf32>
    %157 = arith.mulf %156, %155 : vector<8x32xf32>
    %158 = vector.broadcast %139 : vector<1x32xf32> to vector<8x32xf32>
    %159 = arith.addf %157, %158 : vector<8x32xf32>
    %160 = arith.truncf %159 : vector<8x32xf32> to vector<8x32xbf16>
    %c0_52 = arith.constant 0 : index
    %c0_53 = arith.constant 0 : index
    %161 = vector.load %arg9[%c0_52, %c0_53] : memref<32x64xbf16, #tpu.memory_space<vmem>>, vector<32x64xbf16>
    %cst_54 = arith.constant dense<0.000000e+00> : vector<8x64xf32>
    %162 = tpu.matmul %160, %161, %cst_54 {dimension_numbers = #tpu.dot_dimension_numbers<[1], [0], [0], [1], [0, 0, 1, 1], [], []>} : vector<8x32xbf16>, vector<32x64xbf16>, vector<8x64xf32> -> vector<8x64xf32>
    %c0_55 = arith.constant 0 : index
    %c0_56 = arith.constant 0 : index
    %163 = vector.load %arg10[%c0_55, %c0_56] : memref<1x64xf32, #tpu.memory_space<vmem>>, vector<1x64xf32>
    %164 = vector.broadcast %163 : vector<1x64xf32> to vector<8x64xf32>
    %165 = arith.addf %162, %164 : vector<8x64xf32>
    %cst_57 = arith.constant 0.000000e+00 : f32
    %166 = vector.broadcast %cst_57 : f32 to vector<8x64xf32>
    %167 = arith.maximumf %165, %166 : vector<8x64xf32>
    %168 = arith.truncf %167 : vector<8x64xf32> to vector<8x64xbf16>
    %c0_58 = arith.constant 0 : index
    %c0_59 = arith.constant 0 : index
    %169 = vector.load %arg11[%c0_58, %c0_59] : memref<64x32xbf16, #tpu.memory_space<vmem>>, vector<64x32xbf16>
    %cst_60 = arith.constant dense<0.000000e+00> : vector<8x32xf32>
    %170 = tpu.matmul %168, %169, %cst_60 {dimension_numbers = #tpu.dot_dimension_numbers<[1], [0], [0], [1], [0, 0, 1, 1], [], []>} : vector<8x64xbf16>, vector<64x32xbf16>, vector<8x32xf32> -> vector<8x32xf32>
    %c0_61 = arith.constant 0 : index
    %c0_62 = arith.constant 0 : index
    %171 = vector.load %arg12[%c0_61, %c0_62] : memref<1x32xf32, #tpu.memory_space<vmem>>, vector<1x32xf32>
    %172 = vector.broadcast %171 : vector<1x32xf32> to vector<8x32xf32>
    %173 = arith.addf %170, %172 : vector<8x32xf32>
    %174 = arith.addf %137, %173 : vector<8x32xf32>
    %c0_63 = arith.constant 0 : index
    %c0_64 = arith.constant 0 : index
    %c0_65 = arith.constant 0 : index
    %175 = vector.load %arg13[%c0_63, %c0_64, %c0_65] : memref<1x8x32xf32, #tpu.memory_space<vmem>>, vector<1x8x32xf32>
    %176 = vector.shape_cast %175 : vector<1x8x32xf32> to vector<8x32xf32>
    %177 = vector.shape_cast %174 : vector<8x32xf32> to vector<1x8x32xf32>
    tpu.vector_store %arg13[%c0_63, %c0_64, %c0_65], %177 {strides = array<i32>} : memref<1x8x32xf32, #tpu.memory_space<vmem>>, vector<1x8x32xf32>,
    return
  }
  func.func @transform_0(%arg0: i32) -> (i32, i32, i32) {
    %c0_i32 = arith.constant 0 : i32
    %c0_i32_0 = arith.constant 0 : i32
    %c0_i32_1 = arith.constant 0 : i32
    return %arg0, %c0_i32, %c0_i32_0 : i32, i32, i32
  }
  func.func @transform_1(%arg0: i32) -> (i32, i32) {
    %c0_i32 = arith.constant 0 : i32
    %c0_i32_0 = arith.constant 0 : i32
    %c0_i32_1 = arith.constant 0 : i32
    return %c0_i32, %c0_i32_0 : i32, i32
  }
  func.func @transform_2(%arg0: i32) -> (i32, i32) {
    %c0_i32 = arith.constant 0 : i32
    %c0_i32_0 = arith.constant 0 : i32
    %c0_i32_1 = arith.constant 0 : i32
    return %c0_i32, %c0_i32_0 : i32, i32
  }
  func.func @transform_3(%arg0: i32) -> (i32, i32) {
    %c0_i32 = arith.constant 0 : i32
    %c0_i32_0 = arith.constant 0 : i32
    %c0_i32_1 = arith.constant 0 : i32
    return %c0_i32, %c0_i32_0 : i32, i32
  }
  func.func @transform_4(%arg0: i32) -> (i32, i32) {
    %c0_i32 = arith.constant 0 : i32
    %c0_i32_0 = arith.constant 0 : i32
    %c0_i32_1 = arith.constant 0 : i32
    return %c0_i32, %c0_i32_0 : i32, i32
  }
  func.func @transform_5(%arg0: i32) -> (i32, i32) {
    %c0_i32 = arith.constant 0 : i32
    %c0_i32_0 = arith.constant 0 : i32
    %c0_i32_1 = arith.constant 0 : i32
    return %c0_i32, %c0_i32_0 : i32, i32
  }
  func.func @transform_6(%arg0: i32) -> (i32, i32) {
    %c0_i32 = arith.constant 0 : i32
    %c0_i32_0 = arith.constant 0 : i32
    %c0_i32_1 = arith.constant 0 : i32
    return %c0_i32, %c0_i32_0 : i32, i32
  }
  func.func @transform_7(%arg0: i32) -> (i32, i32) {
    %c0_i32 = arith.constant 0 : i32
    %c0_i32_0 = arith.constant 0 : i32
    %c0_i32_1 = arith.constant 0 : i32
    return %c0_i32, %c0_i32_0 : i32, i32
  }
  func.func @transform_8(%arg0: i32) -> (i32, i32) {
    %c0_i32 = arith.constant 0 : i32
    %c0_i32_0 = arith.constant 0 : i32
    %c0_i32_1 = arith.constant 0 : i32
    return %c0_i32, %c0_i32_0 : i32, i32
  }
  func.func @transform_9(%arg0: i32) -> (i32, i32) {
    %c0_i32 = arith.constant 0 : i32
    %c0_i32_0 = arith.constant 0 : i32
    %c0_i32_1 = arith.constant 0 : i32
    return %c0_i32, %c0_i32_0 : i32, i32
  }
  func.func @transform_10(%arg0: i32) -> (i32, i32) {
    %c0_i32 = arith.constant 0 : i32
    %c0_i32_0 = arith.constant 0 : i32
    %c0_i32_1 = arith.constant 0 : i32
    return %c0_i32, %c0_i32_0 : i32, i32
  }
  func.func @transform_11(%arg0: i32) -> (i32, i32) {
    %c0_i32 = arith.constant 0 : i32
    %c0_i32_0 = arith.constant 0 : i32
    %c0_i32_1 = arith.constant 0 : i32
    return %c0_i32, %c0_i32_0 : i32, i32
  }
  func.func @transform_12(%arg0: i32) -> (i32, i32, i32) {
    %c0_i32 = arith.constant 0 : i32
    %c0_i32_0 = arith.constant 0 : i32
    %c0_i32_1 = arith.constant 0 : i32
    return %arg0, %c0_i32, %c0_i32_0 : i32, i32, i32
  }
}

</mosaic_0001>

<bundles_post_ra>
// kernel: vit_forward.7
= control target key start
LH: loop header
LB: loop body
LE: loop exit
PB: predicated region body
PF: predicated region fallthrough
CT: control target
= control target key end

     0   :  { %vm25_vm0 = vcmask 254976   ;;  %s219_s0 = inlined_call_operand.vmem [shape: f32[2,32], index: 0, kind: input, shape index: {}]   ;;  %s220_s1 = inlined_call_operand.vmem [shape: f32[1,32], index: 1, kind: input, shape index: {}]   ;;  %s221_s2 = inlined_call_operand.vmem [shape: f32[1,32], index: 2, kind: input, shape index: {}]   ;;  %s222_s3 = inlined_call_operand.vmem [shape: bf16[32,128], index: 3, kind: input, shape index: {}]   ;;  %s223_s4 = inlined_call_operand.vmem [shape: f32[1,128], index: 4, kind: input, shape index: {}]   ;;  %s224_s5 = inlined_call_operand.hbm [shape: f32[2,128], index: 5, kind: output, shape index: {}]  }
   0x1   :  { %v22_v0 = vld [vmem:[%s219_s0] sm:$0x3] }
   0x2   :  { %v26_v1 = vsel %vm25_vm0, %v22_v0, 0.0 }
   0x3   :  { %27 = vadd.xlane.f32.xlu0 %v26_v1 }
   0x4   :  { %10 = vsyncpa [#allocation3], 0  ;;  %v164_v2 = vmov 32.0   ;;  %v128_v14 = vld [vmem:[%s222_s3 + $0x8] sm:$0xff]  ;;  %v127_v15 = vld [vmem:[%s222_s3] sm:$0xff]  ;;  %vm84_vm5 = vcmask 261120  }
   0x5   :  { %134 = vrcp.f32 %v164_v2  ;;  %94 = vmatpush.bf16.msra.mxu0 %v128_v14  ;;  %v131_v25 = vld [vmem:[%s220_s1] ss:$0 sm:$0xff]  ;;  %s165_s28 = smov [#allocation2]   ;;  %s109_s1 = sshll.u32 %s224_s5, 4  ;;  %s110_s1 = int_to_ptr.hbm [resolvable:$true] %s109_s1 }
   0x6   :  { %v132_v28 = vld [vmem:[%s221_s2] ss:$0 sm:$0xff]  ;;  %s107_s29 = sshll.u32 %s165_s28, 4  ;;  %s108_s29 = int_to_ptr.vmem [resolvable:$true] %s107_s29 }
   0x7   :  { %v133_v32 = vld [vmem:[%s223_s4] ss:$0 sm:$0xff] }
   0x9   :  { %95 = vmatpush.bf16.msra.mxu0 %v127_v15 }
   0xb   :  { %v135_v3 = vpop.eup %134 }
   0xc   :  { %v30_v4 = vmul.f32 32.0, %v135_v3  ;;  %vm34_vm1 = vweird.f32 %v135_v3 }
   0xe   :  { %v31_v5 = vsub.f32 1.0, %v30_v4 }
  0x10   :  { %v32_v6 = vmul.f32 %v135_v3, %v31_v5 }
  0x12   :  { %v33_v7 = vadd.f32 %v135_v3, %v32_v6 }
  0x14   :  { %v35_v8 = vsel %vm34_vm1, %v135_v3, %v33_v7 }
  0x76   :  { %v28_v9 = vpop.xlane.xlu0 %27 }
  0x77   :  { %v36_v10 = vmul.f32 %v35_v8, %v28_v9 }
  0x79   :  { %v37_v11 = vsub.f32 %v22_v0, %v36_v10 }
  0x7b   :  { %v38_v12 = vmul.f32 %v37_v11, %v37_v11 }
  0x7d   :  { %v39_v13 = vsel %vm25_vm0, %v38_v12, 0.0 }
  0x7e   :  { %40 = vadd.xlane.f32.xlu0 %v39_v13 }
  0xf1   :  { %v41_v16 = vpop.xlane.xlu0 %40 }
  0xf2   :  { %v42_v17 = vmul.f32 %v41_v16, %v35_v8 }
  0xf4   :  { %v43_v18 = vadd.f32 1e-12, %v42_v17 }
  0xf6   :  { %136 = vrsqrt.f32 %v43_v18  ;;  %vm50_vm3 = vweird.f32 %v43_v18 }
  0xfc   :  { %v137_v19 = vpop.eup %136 }
  0xfd   :  { %v45_v20 = vmul.f32 %v137_v19, %v43_v18  ;;  %vm51_vm2 = vweird.f32 %v137_v19 }
  0xfe   :  { %vm52_vm4 = vmor %vm50_vm3, %vm51_vm2 }
  0xff   :  { %v46_v21 = vmul.f32 %v137_v19, %v45_v20 }
 0x101   :  { %v47_v22 = vmul.f32 0.5, %v46_v21 }
 0x103   :  { %v48_v23 = vsub.f32 1.5, %v47_v22 }
 0x105   :  { %v49_v24 = vmul.f32 %v137_v19, %v48_v23 }
 0x107   :  { %v53_v26 = vsel %vm52_vm4, %v137_v19, %v49_v24 }
 0x108   :  { %v54_v27 = vmul.f32 %v53_v26, %v37_v11 }
 0x10a   :  { %v58_v29 = vmul.f32 %v131_v25, %v54_v27 }
 0x10c   :  { %v62_v30 = vadd.f32 %v132_v28, %v58_v29 }
 0x10e   :  { %v63_v31 = vpack.c.bf16 %v62_v30, %v62_v30 }
 0x110   :  { %126 = vmatmul.msk.bf16.vlgmr.msra.gmra.mxu0 %vm84_vm5, %v63_v31 }
 0x18d   :  { %v97_v33 = vpop.f32.mrf.mxu0 }
 0x18e   :  { %v98_v34 = vadd.f32 %v133_v32, %v97_v33 }
 0x190   :  { %101 = vst [vmem:[#allocation2] sm:$0x3] %v98_v34 }
 0x191   :  { %112 = dma.vmem_to_hbm [thread:$0]  %s108_s29, 32, %s110_s1, [#allocation3]  }
 0x195   :  { %v99_v35 = vpop.f32.mrf.mxu0 }
 0x196   :  { %162 = dma.done.wait [#allocation3], 32  }
 0x197   :  { %163 = vsyncadd [#allocation3], 4294967264 }
 0x198   :  { %117 = vsyncpa [#allocation3], 1 }

// kernel: vit_forward.4
= control target key start
LH: loop header
LB: loop body
LE: loop exit
PB: predicated region body
PF: predicated region fallthrough
CT: control target
= control target key end

     0   :  { %vm119_vm0 = vcmask 523264   ;;  %vm149_vm1 = vcmask 261120   ;;  %s285_s1 = inlined_call_operand.vmem [shape: bf16[192,32], index: 1, kind: input, shape index: {}]   ;;  %s286_s0 = inlined_call_operand.vmem [shape: f32[8,192], index: 0, kind: input, shape index: {}]   ;;  %s287_s2 = inlined_call_operand.vmem [shape: f32[1,32], index: 2, kind: input, shape index: {}]   ;;  %s288_s3 = inlined_call_operand.vmem [shape: f32[8,32], index: 3, kind: output, shape index: {}]  }
   0x1   :  { %v211_v0 = vld [vmem:[%s285_s1 + $0x38] sm:$0xff]  ;;  %v210_v2 = vld [vmem:[%s285_s1 + $0x30] sm:$0xff]  ;;  %v209_v4 = vld [vmem:[%s285_s1 + $0x28] sm:$0xff] }
   0x2   :  { %v215_v1 = vld [vmem:[%s285_s1 + $0x58] sm:$0xff]  ;;  %123 = vmatpush.bf16.msra.mxu0 %v211_v0  ;;  %v214_v3 = vld [vmem:[%s285_s1 + $0x50] sm:$0xff]  ;;  %v213_v5 = vld [vmem:[%s285_s1 + $0x48] sm:$0xff] }
   0x3   :  { %140 = vmatpush.bf16.msra.mxu1 %v215_v1  ;;  %v208_v6 = vld [vmem:[%s285_s1 + $0x20] sm:$0xff]  ;;  %v16_v8 = vld [vmem:[%s286_s0 + $0x8] sm:$0xff]  ;;  %v207_v9 = vld [vmem:[%s285_s1 + $0x18] sm:$0xff] }
   0x4   :  { %v212_v7 = vld [vmem:[%s285_s1 + $0x40] sm:$0xff]  ;;  %v18_v10 = vpack.c.bf16 %v16_v8, %v16_v8  ;;  %v206_v11 = vld [vmem:[%s285_s1 + $0x10] sm:$0xff]  ;;  %v205_v12 = vld [vmem:[%s285_s1 + $0x8] sm:$0xff] }
   0x5   :  { %v204_v13 = vld [vmem:[%s285_s1] sm:$0xff] }
   0x6   :  { %124 = vmatpush.bf16.msra.mxu0 %v210_v2  ;;  %v15_v14 = vld [vmem:[%s286_s0] sm:$0xff] }
   0x7   :  { %141 = vmatpush.bf16.msra.mxu1 %v214_v3  ;;  %v17_v15 = vpack.c.bf16 %v15_v14, %v15_v14  ;;  %v216_v18 = vld [vmem:[%s287_s2] ss:$0 sm:$0xff] }
   0xa   :  { %125 = vmatpush.bf16.msra.mxu0 %v209_v4 }
   0xb   :  { %142 = vmatpush.bf16.msra.mxu1 %v213_v5 }
   0xe   :  { %126 = vmatpush.bf16.msra.mxu0 %v208_v6 }
   0xf   :  { %143 = vmatpush.bf16.msra.mxu1 %v212_v7 }
  0x12   :  { %127 = vmatpush.bf16.msra.mxu0 %v207_v9  ;;  %203 = vmatmul.msk.bf16.vlgmr.msra.gmra.mxu1 %vm119_vm0, %v18_v10 }
  0x16   :  { %128 = vmatpush.bf16.msra.mxu0 %v206_v11 }
  0x1a   :  { %129 = vmatpush.bf16.msra.mxu0 %v205_v12 }
  0x1e   :  { %130 = vmatpush.bf16.msra.mxu0 %v204_v13 }
  0x21   :  { %131 = vmatmul.bf16.vlgmr.msra.gmra.mxu0 %v17_v15 }
  0x8f   :  { %v145_v16 = vpop.f32.mrf.mxu1 }
  0x97   :  { %v147_v17 = vpop.f32.mrf.mxu1 }
  0x9e   :  { %v132_v19 = vpop.f32.mrf.mxu0 }
  0x9f   :  { %v133_v20 = vadd.f32 %v216_v18, %v132_v19 }
  0xa1   :  { %v146_v21 = vadd.f32 %v145_v16, %v133_v20 }
  0xa3   :  { %150 = vst.msk [vmem:[%s288_s3] sm:$0xff] %vm149_vm1, %v146_v21 }
  0xa6   :  { %v134_v22 = vpop.f32.mrf.mxu0 }

// kernel: vit_forward.5
= control target key start
LH: loop header
LB: loop body
LE: loop exit
PB: predicated region body
PF: predicated region fallthrough
CT: control target
= control target key end

     0   :  { %s1298_s21 = smov 0   ;;  %s1459_s0 = inlined_call_operand.vmem [shape: f32[2,8,32], index: 0, kind: input, shape index: {}]   ;;  %s1460_s1 = inlined_call_operand.vmem [shape: f32[1,32], index: 1, kind: input, shape index: {}]   ;;  %s1461_s2 = inlined_call_operand.vmem [shape: f32[1,32], index: 2, kind: input, shape index: {}]   ;;  %s1462_s3 = inlined_call_operand.vmem [shape: bf16[32,192], index: 3, kind: input, shape index: {}]   ;;  %s1463_s4 = inlined_call_operand.vmem [shape: bf16[64,32], index: 4, kind: input, shape index: {}]   ;;  %s1464_s5 = inlined_call_operand.vmem [shape: f32[1,32], index: 5, kind: input, shape index: {}]   ;;  %s1465_s6 = inlined_call_operand.vmem [shape: f32[1,32], index: 6, kind: input, shape index: {}]   ;;  %s1466_s7 = inlined_call_operand.vmem [shape: f32[1,32], index: 7, kind: input, shape index: {}]   ;;  %s1467_s8 = inlined_call_operand.vmem [shape: bf16[32,64], index: 8, kind: input, shape index: {}]   ;;  %s1468_s9 = inlined_call_operand.vmem [shape: f32[1,64], index: 9, kind: input, shape index: {}]   ;;  %s1469_s10 = inlined_call_operand.vmem [shape: bf16[64,32], index: 10, kind: input, shape index: {}]   ;;  %s1470_s11 = inlined_call_operand.vmem [shape: f32[1,32], index: 11, kind: input, shape index: {}]   ;;  %s1471_s12 = inlined_call_operand.vmem [shape: f32[2,8,32], index: 12, kind: output, shape index: {}]  }
   0x1 LB: > { %s1075_s22 = sadd.s32 4294967295, %s1222_s21   ;;  %p1079_p0 = scmp.ge.s32.totalorder %s1222_s21, 1  ;;  %s1222_s21 = sphi %s1298_s21, %s22_s21  }
   0x2   : > { %p361_p1 = scmp.lt.s32.totalorder %s1222_s21, 3 }
   0x4   : > { %p362_p2 = pnand %p1079_p0, %p361_p1 }
   0x5   : > { %p401_p3 = scmp.lt.s32.totalorder (!%p362_p2), %s1075_s22, 1  ;;  %s1225_s16 = smov (!%p362_p2), 112  }
   0x6   : > { %365 = sbr.rel (%p362_p2) target bundleno = 2027 (0x7eb), region = 68  ;;  %s1226_s17 = smov (!%p362_p2), 48  }
   0x7   : > { %s1227_s18 = smov (!%p362_p2), 64   ;;  %s1228_s19 = smov (!%p362_p2), 16  }
   0x8   : > { %s1229_s20 = smov (!%p362_p2), 32   ;;  %s1230_s24 = smov (!%p362_p2), 80  }
   0x9   : > { %s1231_s25 = smov (!%p362_p2), 96  }
   0xb   : > { %s1473_s22 = smov (!%p401_p3, %s1075_s22), 1  ;;  %vm413_vm0 = vcmask 261120   ;;  %v1224_v2 = vmov 32.0   ;;  %v1092_v14 = vld [vmem:[%s1462_s3 + $0x10] sm:$0xf]  ;;  %v1160_v42 = vld [vmem:[%s1463_s4] sm:$0xff]  ;;  %v505_v62 = vlaneseq }
   0xc   : > { %s1080_s23 = sshll.u32 %s1473_s22, 3  ;;  %1194 = vrcp.f32 %v1224_v2  ;;  %v1159_v15 = vld [vmem:[%s1462_s3 + $0x14] sm:$0xf0]  ;;  %v1158_v16 = vld [vmem:[%s1462_s3 + $0x14] sm:$0xf]  ;;  %578 = vmatpush.bf16.msra.mxu3 %v1160_v42  ;;  %vm513_vm5 = vcmask 130048  }
   0xd   : > { %s404_s26 = scalar_lea.vmem %s1459_s0, %s1080_s23  ;;  %v1093_v17 = vor.u32 %v1159_v15, %v1092_v14  ;;  %v1094_v18 = vld [vmem:[%s1462_s3 + $0x18] sm:$0xf0]  ;;  %v1084_v19 = vld [vmem:[%s1462_s3] sm:$0xf]  ;;  %v1157_v20 = vld [vmem:[%s1462_s3 + $0x4] sm:$0xf0] }
   0xe   : > { %v1314_v0 = vld [vmem:[%s404_s26] sm:$0xff]  ;;  %v1097_v21 = vor.u32 %v1158_v16, %v1094_v18  ;;  %v1086_v23 = vld [vmem:[%s1462_s3 + $0x8] sm:$0xf0]  ;;  %v1085_v24 = vor.u32 %v1157_v20, %v1084_v19  ;;  %vm664_vm6 = vcmask 1043456   ;;  %vm533_vm8 = vcmask 64512   ;;  %v1163_v18 = vld [vmem:[%s1463_s4 + $0x18] sm:$0xff]  ;;  %s408_s26 = scalar_lea.vmem %s1471_s12, %s1080_s23 }
   0xf   : > { %v414_v1 = vsel %vm413_vm0, %v1314_v0, 0.0  ;;  %v1156_v22 = vld [vmem:[%s1462_s3 + $0x4] sm:$0xf]  ;;  %485 = vmatpush.bf16.msra.mxu0 %v1093_v17  ;;  %v1187_v35 = vld [vmem:[%s1460_s1] ss:$0 sm:$0xff]  ;;  %v1161_v17 = vld [vmem:[%s1463_s4 + $0x8] sm:$0xff] }
  0x10   : > { %415 = vadd.xlane.f32.xlu0 %v414_v1  ;;  %498 = vmatpush.bf16.msra.mxu1 %v1097_v21  ;;  %v1089_v25 = vor.u32 %v1156_v22, %v1086_v23  ;;  %v1188_v38 = vld [vmem:[%s1461_s2] ss:$0 sm:$0xff]  ;;  %v506_v1 = vand.u32 127, %v505_v62  ;;  %v1162_v19 = vld [vmem:[%s1463_s4 + $0x10] sm:$0xff] }
  0x12   : > { %v1195_v3 = vpop.eup %1194  ;;  %vm507_vm7 = vcmp.lt.s32.totalorder %v506_v1, 5 }
  0x13   : > { %v418_v4 = vmul.f32 32.0, %v1195_v3  ;;  %vm422_vm1 = vweird.f32 %v1195_v3  ;;  %486 = vmatpush.bf16.msra.mxu0 %v1085_v24 }
  0x14   : > { %499 = vmatpush.bf16.msra.mxu1 %v1089_v25 }
  0x15   : > { %v419_v5 = vsub.f32 1.0, %v418_v4 }
  0x17   : > { %v420_v6 = vmul.f32 %v1195_v3, %v419_v5  ;;  %654 = vmatpush.bf16.msrb.mxu0 %v1161_v17 }
  0x19   : > { %v421_v7 = vadd.f32 %v1195_v3, %v420_v6 }
  0x1b   : > { %v1318_v8 = vsel %vm422_vm1, %v1195_v3, %v421_v7  ;;  %v1232_v3 = vmov -1e+30  }
  0x1c   : > { %v1370_v4 = vsel %vm507_vm7, 0.0, %v1232_v3 }
  0x83   : > { %v416_v9 = vpop.xlane.xlu0 %415 }
  0x84   : > { %v424_v10 = vmul.f32 %v1318_v8, %v416_v9 }
  0x86   : > { %v425_v11 = vsub.f32 %v1314_v0, %v424_v10 }
  0x88   : > { %v426_v12 = vmul.f32 %v425_v11, %v425_v11 }
  0x8a   : > { %v427_v13 = vsel %vm413_vm0, %v426_v12, 0.0 }
  0x8b   : > { %428 = vadd.xlane.f32.xlu0 %v427_v13 }
  0xfe   : > { %v429_v26 = vpop.xlane.xlu0 %428 }
  0xff   : > { %v430_v27 = vmul.f32 %v429_v26, %v1318_v8 }
 0x101   : > { %v431_v28 = vadd.f32 1e-12, %v430_v27 }
 0x103   : > { %1196 = vrsqrt.f32 %v431_v28  ;;  %vm438_vm3 = vweird.f32 %v431_v28 }
 0x109   : > { %v1197_v29 = vpop.eup %1196 }
 0x10a   : > { %v433_v30 = vmul.f32 %v1197_v29, %v431_v28  ;;  %vm439_vm2 = vweird.f32 %v1197_v29 }
 0x10b   : > { %vm440_vm4 = vmor %vm438_vm3, %vm439_vm2 }
 0x10c   : > { %v434_v31 = vmul.f32 %v1197_v29, %v433_v30 }
 0x10e   : > { %v435_v32 = vmul.f32 0.5, %v434_v31 }
 0x110   : > { %v436_v33 = vsub.f32 1.5, %v435_v32 }
 0x112   : > { %v437_v34 = vmul.f32 %v1197_v29, %v436_v33 }
 0x114   : > { %v441_v36 = vsel %vm440_vm4, %v1197_v29, %v437_v34 }
 0x115   : > { %v442_v37 = vmul.f32 %v441_v36, %v425_v11 }
 0x117   : > { %v446_v39 = vmul.f32 %v1187_v35, %v442_v37 }
 0x119   : > { %v450_v40 = vadd.f32 %v1188_v38, %v446_v39 }
 0x11b   : > { %v451_v41 = vpack.c.bf16 %v450_v40, %v450_v40 }
 0x11d   : > { %1098 = vmatmul.msk.bf16.vlgmr.msra.gmra.mxu0 %vm413_vm0, %v451_v41  ;;  %1099 = vmatmul.msk.bf16.vlgmr.msra.gmra.mxu1 %vm413_vm0, %v451_v41 }
 0x11e   : > { %768 = vmatpush.bf16.msra.mxu0 %v1162_v19 }
 0x19a   : > { %v488_v43 = vpop.f32.mrf.mxu0  ;;  %v501_v44 = vpop.f32.mrf.mxu1 }
 0x19b   : > { %v509_v45 = vpack.c.bf16 %v488_v43, %v488_v43  ;;  %v559_v46 = vpack.c.bf16 %v501_v44, %v501_v44 }
 0x19d   : > { %1105 = vmatmul.msk.bf16.vlgmr.msra.gmra.mxu3 %vm513_vm5, %v559_v46  ;;  %585 = vrot.lane.b32.xlu0 %v509_v45, %s1225_s16 }
 0x19e   : > { %587 = vrot.lane.b32.xlu2 %v509_v45, %s1226_s17  ;;  %511 = vrot.lane.b32.xlu1 %v509_v45, %s1227_s18 }
 0x1a2   : > { %v490_v47 = vpop.f32.mrf.mxu0  ;;  %v503_v48 = vpop.f32.mrf.mxu1 }
 0x1a5   : > { %797 = vrot.lane.b32.xlu0 %v509_v45, %s1228_s19 }
 0x1a6   : > { %702 = vrot.lane.b32.xlu2 %v509_v45, %s1229_s20 }
 0x1ad   : > { %795 = vrot.lane.b32.xlu0 %v509_v45, %s1230_s24 }
 0x1b5   : > { %750 = vrot.lane.b32.xlu0 %v559_v46, %s1231_s25 }
 0x1f8   : > { %v588_v49 = vpop.permute.xlu2 %587 }
 0x1f9   : > { %v593_v50 = vsel %vm513_vm5, %v588_v49, 0 }
 0x1fa   : > { %602 = vmatpush.bf16.xpose.msrb.mxu3 %v593_v50 }
 0x200   : > { %v703_v51 = vpop.permute.xlu2 %702 }
 0x201   : > { %v708_v52 = vsel %vm513_vm5, %v703_v51, 0 }
 0x202   : > { %717 = vmatpush.bf16.xpose.msra.mxu3 %v708_v52 }
 0x20f   : > { %v586_v53 = vpop.permute.xlu0 %585 }
 0x210   : > { %v512_v54 = vpop.permute.xlu1 %511  ;;  %1106 = vmatmul.msk.bf16.vlgmr.msrb.gmra.mxu3 %vm513_vm5, %v586_v53 }
 0x211   : > { %v518_v55 = vsel %vm513_vm5, %v512_v54, 0  ;;  %863 = vmatpush.bf16.msrb.mxu3 %v1163_v18 }
 0x212   : > { %527 = vmatpush.bf16.xpose.msra.mxu2 %v518_v55 }
 0x217   : > { %v798_v57 = vpop.permute.xlu0 %797 }
 0x218   : > { %v803_v60 = vsel %vm513_vm5, %v798_v57, 0 }
 0x219   : > { %1100 = vmatmul.msk.bf16.vlgmr.msra.gmra.mxu2 %vm513_vm5, %v509_v45 }
 0x21f   : > { %v796_v35 = vpop.permute.xlu0 %795 }
 0x220   : > { %v580_v56 = vpop.f32.mrf.mxu3 }
 0x221   : > { %v584_v58 = vpack.c.bf16 %v580_v56, %v580_v56 }
 0x223   : > { %v685_v59 = vsel %vm664_vm6, %v584_v58, 0 }
 0x224   : > { %694 = vmatpush.bf16.msrb.mxu2 %v685_v59 }
 0x227   : > { %v751_v37 = vpop.permute.xlu0 %750 }
 0x228   : > { %812 = vmatpush.bf16.xpose.msra.mxu2 %v803_v60  ;;  %v582_v61 = vpop.f32.mrf.mxu3 }
 0x293   : > { %v604_v63 = vpop.f32.mrf.mxu3 }
 0x294   : > { %v605_v15 = vadd.f32 %v604_v63, %v1370_v4 }
 0x296   : > { %v608_v16 = vsel %vm533_vm8, %v605_v15, -inf }
 0x29b   : > { %v606_v2 = vpop.f32.mrf.mxu3 }
 0x29c   : > { %v529_v5 = vpop.f32.mrf.mxu2 }
 0x29d   : > { %v530_v6 = vadd.f32 %v529_v5, %v1370_v4 }
 0x29f   : > { %v534_v7 = vsel %vm533_vm8, %v530_v6, -inf }
 0x2a0   : > { %535 = vmax.xlane.f32.xlu1 %v534_v7 }
 0x2a4   : > { %v531_v9 = vpop.f32.mrf.mxu2 }
 0x2b9   : > { %845 = vrot.lane.b32.xlu1 %v559_v46, %s1230_s24 }
 0x313   : > { %v536_v10 = vpop.xlane.xlu1 %535 }
 0x314   : > { %v537_v11 = vsub.f32 %v530_v6, %v536_v10 }
 0x316   : > { %v538_v12 = vmul.f32 1.442695, %v537_v11 }
 0x318   : > { %1198 = vpow2.f32 %v538_v12 }
 0x31e   : > { %v1199_v13 = vpop.eup %1198 }
 0x31f   : > { %v540_v14 = vsel %vm533_vm8, %v1199_v13, 0.0 }
 0x320   : > { %541 = vadd.xlane.f32.xlu2 %v540_v14 }
 0x32b   : > { %v846_v36 = vpop.permute.xlu1 %845 }
 0x338   : > { %700 = vrot.lane.b32.xlu2 %v509_v45, %s1231_s25 }
 0x340   : > { %636 = vrot.lane.b32.xlu2 %v559_v46, %s1225_s16 }
 0x369   : > { %609 = vmax.xlane.f32.xlu2 %v608_v16 }
 0x393   : > { %v542_v20 = vpop.xlane.xlu2 %541 }
 0x394   : > { %1200 = vrcp.f32 %v542_v20  ;;  %v554_v25 = vand.u32 2147483648, %v542_v20  ;;  %v552_v27 = vand.u32 2147483647, %v542_v20  ;;  %vm548_vm10 = vweird.f32 %v542_v20 }
 0x396   : > { %v555_v29 = vor.u32 1.1754944e-38, %v554_v25  ;;  %vm553_vm12 = vcmp.eq.f32.partialorder %v552_v27, 8.507059e+37 }
 0x39a   : > { %v1201_v21 = vpop.eup %1200 }
 0x39b   : > { %v544_v22 = vmul.f32 %v1201_v21, %v542_v20  ;;  %v701_v23 = vpop.permute.xlu2 %700  ;;  %vm549_vm9 = vweird.f32 %v1201_v21 }
 0x39c   : > { %1114 = vmatmul.msk.bf16.vlgmr.msra.gmra.mxu3 %vm513_vm5, %v701_v23  ;;  %vm550_vm11 = vmor %vm548_vm10, %vm549_vm9 }
 0x39d   : > { %v545_v24 = vsub.f32 1.0, %v544_v22 }
 0x39f   : > { %v546_v26 = vmul.f32 %v1201_v21, %v545_v24 }
 0x3a1   : > { %v547_v28 = vadd.f32 %v1201_v21, %v546_v26 }
 0x3a3   : > { %v637_v30 = vpop.permute.xlu2 %636  ;;  %v551_v31 = vsel %vm550_vm11, %v1201_v21, %v547_v28 }
 0x3a4   : > { %1111 = vmatmul.msk.bf16.vlgmr.msrb.gmra.mxu0 %vm513_vm5, %v637_v30  ;;  %v556_v32 = vsel %vm553_vm12, %v555_v29, %v551_v31 }
 0x3a5   : > { %v557_v33 = vmul.f32 %v1199_v13, %v556_v32 }
 0x3a7   : > { %v558_v34 = vpack.c.bf16 %v557_v33, %v557_v33 }
 0x3a9   : > { %1113 = vmatmul.msk.bf16.vlgmr.msrb.gmra.mxu2 %vm533_vm8, %v558_v34 }
 0x3ac   : > { %1126 = vmatmul.msk.bf16.vlgmr.msrb.gmra.mxu3 %vm513_vm5, %v846_v36 }
 0x3b4   : > { %1119 = vmatmul.msk.bf16.vlgmr.msra.gmra.mxu0 %vm513_vm5, %v751_v37 }
 0x3b9   : > { %1121 = vmatmul.msk.bf16.vlgmr.msra.gmra.mxu2 %vm513_vm5, %v796_v35 }
 0x3dc   : > { %v610_v38 = vpop.xlane.xlu2 %609 }
 0x3dd   : > { %v611_v39 = vsub.f32 %v605_v15, %v610_v38 }
 0x3df   : > { %v612_v40 = vmul.f32 1.442695, %v611_v39 }
 0x3e1   : > { %1202 = vpow2.f32 %v612_v40 }
 0x3e7   : > { %v1203_v41 = vpop.eup %1202 }
 0x3e8   : > { %v614_v42 = vsel %vm533_vm8, %v1203_v41, 0.0 }
 0x3e9   : > { %615 = vadd.xlane.f32.xlu2 %v614_v42 }
 0x41f   : > { %v719_v43 = vpop.f32.mrf.mxu3 }
 0x420   : > { %v720_v44 = vadd.f32 %v719_v43, %v1370_v4 }
 0x421   : > { %v656_v45 = vpop.f32.mrf.mxu0 }
 0x422   : > { %v660_v46 = vpack.c.bf16 %v656_v45, %v656_v45  ;;  %v723_v47 = vsel %vm533_vm8, %v720_v44, -inf }
 0x423   : > { %724 = vmax.xlane.f32.xlu0 %v723_v47 }
 0x424   : > { %v666_v48 = vsel %vm664_vm6, %v660_v46, 0 }
 0x425   : > { %675 = vmatpush.bf16.msrb.mxu1 %v666_v48 }
 0x427   : > { %v721_v49 = vpop.f32.mrf.mxu3 }
 0x429   : > { %v658_v50 = vpop.f32.mrf.mxu0 }
 0x42c   : > { %v1399_v51 = vpop.f32.mrf.mxu2 }
 0x42f   : > { %v865_v52 = vpop.f32.mrf.mxu3 }
 0x430   : > { %v869_v53 = vpack.c.bf16 %v865_v52, %v865_v52 }
 0x431   : > { %v770_v54 = vpop.f32.mrf.mxu0 }
 0x432   : > { %v874_v55 = vsel %vm664_vm6, %v869_v53, 0  ;;  %v774_v56 = vpack.c.bf16 %v770_v54, %v770_v54 }
 0x433   : > { %883 = vmatpush.bf16.msrb.mxu0 %v874_v55 }
 0x434   : > { %v779_v57 = vsel %vm664_vm6, %v774_v56, 0  ;;  %v698_v58 = vpop.f32.mrf.mxu2 }
 0x435   : > { %788 = vmatpush.bf16.msra.mxu1 %v779_v57 }
 0x437   : > { %v867_v59 = vpop.f32.mrf.mxu3 }
 0x438   : > { %v1189_v59 = vld [vmem:[%s1464_s5] ss:$0 sm:$0xff] }
 0x439   : > { %v772_v60 = vpop.f32.mrf.mxu0 }
 0x43c   : > { %v814_v61 = vpop.f32.mrf.mxu2 }
 0x43d   : > { %v815_v62 = vadd.f32 %v814_v61, %v1370_v4 }
 0x43f   : > { %v818_v63 = vsel %vm533_vm8, %v815_v62, -inf }
 0x440   : > { %819 = vmax.xlane.f32.xlu1 %v818_v63 }
 0x444   : > { %v816_v1 = vpop.f32.mrf.mxu2 }
 0x45c   : > { %v616_v2 = vpop.xlane.xlu2 %615 }
 0x45d   : > { %1204 = vrcp.f32 %v616_v2  ;;  %v628_v7 = vand.u32 2147483648, %v616_v2  ;;  %v626_v10 = vand.u32 2147483647, %v616_v2  ;;  %vm622_vm14 = vweird.f32 %v616_v2 }
 0x45f   : > { %v629_v12 = vor.u32 1.1754944e-38, %v628_v7  ;;  %vm627_vm1 = vcmp.eq.f32.partialorder %v626_v10, 8.507059e+37  ;;  %v1169_v10 = vld [vmem:[%s1469_s10 + $0x18] sm:$0xff] }
 0x460   : > { %1011 = vmatpush.bf16.msrb.mxu2 %v1169_v10 }
 0x463   : > { %v1205_v3 = vpop.eup %1204 }
 0x464   : > { %v618_v5 = vmul.f32 %v1205_v3, %v616_v2  ;;  %vm623_vm13 = vweird.f32 %v1205_v3 }
 0x465   : > { %vm624_vm15 = vmor %vm622_vm14, %vm623_vm13  ;;  %vm1003_vm13 = vcmask 523264  }
 0x466   : > { %v619_v6 = vsub.f32 1.0, %v618_v5 }
 0x468   : > { %v620_v9 = vmul.f32 %v1205_v3, %v619_v6 }
 0x46a   : > { %v621_v11 = vadd.f32 %v1205_v3, %v620_v9  ;;  %v1165_v9 = vld [vmem:[%s1467_s8 + $0x8] sm:$0xff] }
 0x46c   : > { %v625_v13 = vsel %vm624_vm15, %v1205_v3, %v621_v11 }
 0x46d   : > { %v630_v4 = vsel %vm627_vm1, %v629_v12, %v625_v13  ;;  %v1168_v13 = vld [vmem:[%s1469_s10 + $0x10] sm:$0xff] }
 0x46e   : > { %v631_v14 = vmul.f32 %v1203_v41, %v630_v4  ;;  %1012 = vmatpush.bf16.msrb.mxu2 %v1168_v13 }
 0x470   : > { %v632_v15 = vpack.c.bf16 %v631_v14, %v631_v14  ;;  %v1167_v14 = vld [vmem:[%s1469_s10 + $0x8] sm:$0xff] }
 0x472   : > { %1112 = vmatmul.msk.bf16.vlgmr.msrb.gmra.mxu1 %vm533_vm8, %v632_v15  ;;  %1013 = vmatpush.bf16.msrb.mxu2 %v1167_v14 }
 0x473   : > { %958 = vmatpush.bf16.msrb.mxu1 %v1165_v9 }
 0x496   : > { %v725_v16 = vpop.xlane.xlu0 %724 }
 0x497   : > { %v726_v17 = vsub.f32 %v720_v44, %v725_v16 }
 0x499   : > { %v727_v18 = vmul.f32 1.442695, %v726_v17 }
 0x49b   : > { %1206 = vpow2.f32 %v727_v18 }
 0x4a1   : > { %v1207_v19 = vpop.eup %1206 }
 0x4a2   : > { %v729_v20 = vsel %vm533_vm8, %v1207_v19, 0.0 }
 0x4a3   : > { %730 = vadd.xlane.f32.xlu0 %v729_v20  ;;  %v1190_v20 = vld [vmem:[%s1465_s6] ss:$0 sm:$0xff] }
 0x4b3   : > { %v820_v21 = vpop.xlane.xlu1 %819 }
 0x4b4   : > { %v821_v22 = vsub.f32 %v815_v62, %v820_v21 }
 0x4b6   : > { %v822_v23 = vmul.f32 1.442695, %v821_v22 }
 0x4b8   : > { %1208 = vpow2.f32 %v822_v23  ;;  %v1191_v23 = vld [vmem:[%s1466_s7] ss:$0 sm:$0xff] }
 0x4be   : > { %v1209_v24 = vpop.eup %1208 }
 0x4bf   : > { %v824_v25 = vsel %vm533_vm8, %v1209_v24, 0.0 }
 0x4c0   : > { %825 = vadd.xlane.f32.xlu2 %v824_v25 }
 0x4ef   : > { %v677_v26 = vpop.f32.mrf.mxu1 }
 0x4f0   : > { %v697_v57 = vadd.f32 %v1399_v51, %v677_v26 }
 0x4f7   : > { %v679_v27 = vpop.f32.mrf.mxu1 }
 0x4f8   : > { %v1166_v27 = vld [vmem:[%s1469_s10] sm:$0xff] }
 0x4f9   : > { %1014 = vmatpush.bf16.msrb.mxu2 %v1166_v27 }
 0x516   : > { %v731_v28 = vpop.xlane.xlu0 %730 }
 0x517   : > { %1210 = vrcp.f32 %v731_v28  ;;  %v743_v32 = vand.u32 2147483648, %v731_v28  ;;  %v741_v34 = vand.u32 2147483647, %v731_v28  ;;  %vm737_vm3 = vweird.f32 %v731_v28 }
 0x519   : > { %v744_v36 = vor.u32 1.1754944e-38, %v743_v32  ;;  %vm742_vm5 = vcmp.eq.f32.partialorder %v741_v34, 8.507059e+37  ;;  %v1193_v34 = vld [vmem:[%s1470_s11] ss:$0 sm:$0xff] }
 0x51d   : > { %v1211_v29 = vpop.eup %1210 }
 0x51e   : > { %v733_v30 = vmul.f32 %v1211_v29, %v731_v28  ;;  %vm738_vm2 = vweird.f32 %v1211_v29  ;;  %v1192_v28 = vld [vmem:[%s1468_s9] ss:$0 sm:$0xff] }
 0x51f   : > { %vm739_vm4 = vmor %vm737_vm3, %vm738_vm2 }
 0x520   : > { %v734_v31 = vsub.f32 1.0, %v733_v30 }
 0x522   : > { %v735_v33 = vmul.f32 %v1211_v29, %v734_v31 }
 0x524   : > { %v736_v35 = vadd.f32 %v1211_v29, %v735_v33 }
 0x526   : > { %v740_v37 = vsel %vm739_vm4, %v1211_v29, %v736_v35 }
 0x527   : > { %v745_v38 = vsel %vm742_vm5, %v744_v36, %v740_v37 }
 0x528   : > { %v746_v39 = vmul.f32 %v1207_v19, %v745_v38 }
 0x52a   : > { %v747_v40 = vpack.c.bf16 %v746_v39, %v746_v39 }
 0x52c   : > { %1120 = vmatmul.msk.bf16.vlgmr.msra.gmra.mxu1 %vm533_vm8, %v747_v40 }
 0x533   : > { %v826_v41 = vpop.xlane.xlu2 %825 }
 0x534   : > { %1212 = vrcp.f32 %v826_v41  ;;  %v838_v45 = vand.u32 2147483648, %v826_v41  ;;  %v836_v47 = vand.u32 2147483647, %v826_v41  ;;  %vm832_vm7 = vweird.f32 %v826_v41 }
 0x536   : > { %v839_v49 = vor.u32 1.1754944e-38, %v838_v45  ;;  %vm837_vm10 = vcmp.eq.f32.partialorder %v836_v47, 8.507059e+37 }
 0x53a   : > { %v1213_v42 = vpop.eup %1212 }
 0x53b   : > { %v828_v43 = vmul.f32 %v1213_v42, %v826_v41  ;;  %vm833_vm6 = vweird.f32 %v1213_v42 }
 0x53c   : > { %vm834_vm9 = vmor %vm832_vm7, %vm833_vm6 }
 0x53d   : > { %v829_v44 = vsub.f32 1.0, %v828_v43 }
 0x53f   : > { %v830_v46 = vmul.f32 %v1213_v42, %v829_v44 }
 0x541   : > { %v831_v48 = vadd.f32 %v1213_v42, %v830_v46 }
 0x543   : > { %v835_v50 = vsel %vm834_vm9, %v1213_v42, %v831_v48 }
 0x544   : > { %v840_v52 = vsel %vm837_vm10, %v839_v49, %v835_v50 }
 0x545   : > { %v841_v53 = vmul.f32 %v1209_v24, %v840_v52 }
 0x547   : > { %v842_v54 = vpack.c.bf16 %v841_v53, %v841_v53 }
 0x549   : > { %1127 = vmatmul.msk.bf16.vlgmr.msrb.gmra.mxu0 %vm533_vm8, %v842_v54 }
 0x5a9   : > { %v790_v55 = vpop.f32.mrf.mxu1 }
 0x5aa   : > { %v794_v58 = vadd.f32 %v790_v55, %v697_v57 }
 0x5b1   : > { %v792_v56 = vpop.f32.mrf.mxu1 }
 0x5c6   : > { %v885_v60 = vpop.f32.mrf.mxu0 }
 0x5c7   : > { %v889_v61 = vadd.f32 %v885_v60, %v794_v58 }
 0x5c9   : > { %v894_v62 = vadd.f32 %v1189_v59, %v889_v61 }
 0x5cb   : > { %v895_v63 = vadd.f32 %v894_v62, %v1314_v0  ;;  %v1164_v0 = vld [vmem:[%s1467_s8] sm:$0xff] }
 0x5cc   : > { %959 = vmatpush.bf16.msrb.mxu1 %v1164_v0 }
 0x5cd   : > { %v898_v1 = vsel %vm413_vm0, %v895_v63, 0.0 }
 0x5ce   : > { %899 = vadd.xlane.f32.xlu0 %v898_v1  ;;  %v887_v2 = vpop.f32.mrf.mxu0 }
 0x641   : > { %v900_v3 = vpop.xlane.xlu0 %899 }
 0x642   : > { %v901_v5 = vmul.f32 %v900_v3, %v1318_v8 }
 0x644   : > { %v902_v6 = vsub.f32 %v895_v63, %v901_v5 }
 0x646   : > { %v903_v7 = vmul.f32 %v902_v6, %v902_v6 }
 0x648   : > { %v904_v51 = vsel %vm413_vm0, %v903_v7, 0.0 }
 0x649   : > { %905 = vadd.xlane.f32.xlu2 %v904_v51 }
 0x6bc   : > { %v906_v11 = vpop.xlane.xlu2 %905 }
 0x6bd   : > { %v907_v12 = vmul.f32 %v906_v11, %v1318_v8 }
 0x6bf   : > { %v908_v4 = vadd.f32 1e-12, %v907_v12 }
 0x6c1   : > { %1214 = vrsqrt.f32 %v908_v4  ;;  %vm915_vm11 = vweird.f32 %v908_v4 }
 0x6c7   : > { %v1215_v15 = vpop.eup %1214 }
 0x6c8   : > { %v910_v16 = vmul.f32 %v1215_v15, %v908_v4  ;;  %vm916_vm8 = vweird.f32 %v1215_v15 }
 0x6c9   : > { %vm917_vm12 = vmor %vm915_vm11, %vm916_vm8 }
 0x6ca   : > { %v911_v17 = vmul.f32 %v1215_v15, %v910_v16 }
 0x6cc   : > { %v912_v18 = vmul.f32 0.5, %v911_v17 }
 0x6ce   : > { %v913_v19 = vsub.f32 1.5, %v912_v18 }
 0x6d0   : > { %v914_v8 = vmul.f32 %v1215_v15, %v913_v19 }
 0x6d2   : > { %v918_v21 = vsel %vm917_vm12, %v1215_v15, %v914_v8 }
 0x6d3   : > { %v919_v22 = vmul.f32 %v918_v21, %v902_v6 }
 0x6d5   : > { %v923_v24 = vmul.f32 %v1190_v20, %v919_v22 }
 0x6d7   : > { %v927_v25 = vadd.f32 %v1191_v23, %v923_v24 }
 0x6d9   : > { %v928_v26 = vpack.c.bf16 %v927_v25, %v927_v25 }
 0x6db   : > { %1136 = vmatmul.msk.bf16.vlgmr.msrb.gmra.mxu1 %vm413_vm0, %v928_v26 }
 0x758   : > { %v961_v29 = vpop.f32.mrf.mxu1 }
 0x759   : > { %v962_v30 = vadd.f32 %v1192_v28, %v961_v29 }
 0x75b   : > { %v965_v31 = vmax.f32 %v962_v30, 0.0 }
 0x75d   : > { %v966_v32 = vpack.c.bf16 %v965_v31, %v965_v31 }
 0x75f   : > { %1153 = vmatmul.msk.bf16.vlgmr.msrb.gmra.mxu2 %vm1003_vm13, %v966_v32 }
 0x760   : > { %v963_v33 = vpop.f32.mrf.mxu1 }
 0x7e2   : > { %v1016_v35 = vpop.f32.mrf.mxu2 }
 0x7e3   : > { %v1017_v36 = vadd.f32 %v1193_v34, %v1016_v35 }
 0x7e5   : > { %v1020_v37 = vadd.f32 %v1017_v36, %v895_v63 }
 0x7e7   : > { %1021 = vst.msk [vmem:[%s408_s26] sm:$0xff] %vm413_vm0, %v1020_v37 }
 0x7ea   : > { %v1018_v38 = vpop.f32.mrf.mxu2 }
 0x7eb PF: > { %s22_s21 = sadd.s32 1, %s1222_s21  }
 0x7ec   : > { %p19_p4 = scmp.ge.s32.totalorder %s22_s21, 4  }
 0x7ee   :  { %21 = sbr.rel (!%p19_p4) target bundleno = 1 (0x1), region = 98 }

</bundles_post_ra>
